<compile_context>
chip_gen: v7x
topology: tpu7x:2x2x1
jax: 0.10.0
libtpu: 0.0.40
codegen_flags: <defaults>
</compile_context>

<pallas_src>
import math

import numpy as np

import jax
import jax.numpy as jnp
from jax import lax
from jax.experimental import pallas as pl
from jax.experimental.pallas import tpu as pltpu

# ---------------- model hyper-parameters (small, consistent with a ViT) ------
B = 2          # batch
C = 3          # image channels
IMG = 16       # image height/width
P = 8          # patch size
G = IMG // P   # patches per side
N = G * G      # number of patches
S = N + 1      # sequence length (CLS + patches)
T = B * S      # flattened token count
TP = ((T + 7) // 8) * 8   # token count padded to full sublane groups
D = 32         # transformer width
H = 4          # attention heads
HD = D // H    # head dim
M = 64         # mlp hidden dim
E = 16         # output embed dim
L = 2          # number of transformer layers
CPP = C * P * P
EPS = 1e-5     # LayerNorm eps (PyTorch default)

_VMEM = pl.BlockSpec(memory_space=pltpu.MemorySpace.VMEM)

# layout of the packed (NV, 1, D) "vector parameter" buffer
NV = 4 + 6 * L
_LN_PRE_G, _LN_PRE_B, _LN_POST_G, _LN_POST_B = 0, 1, 2, 3
_LN1_G, _LN1_B, _LN2_G, _LN2_B, _OUT_B, _FC2_B = 0, 1, 2, 3, 4, 5


def _vec_base(li):
    return 4 + 6 * li


def _layernorm(x, g, b):
    mu = jnp.mean(x, axis=-1, keepdims=True)
    var = jnp.mean((x - mu) * (x - mu), axis=-1, keepdims=True)
    return (x - mu) * lax.rsqrt(var + EPS) * g + b


# ---------------- the single fused kernel ------------------------------------
def _encoder_kernel(patches_ref, convw_ref, add_ref, bidc_ref, bidr_ref,
                    vecs_ref, wqkv_ref, bqkv_ref, wo_ref,
                    fc1w_ref, fc1b_ref, fc2w_ref, proj_ref,
                    out_ref, qkv_scr, cat_scr):
    f32 = jnp.float32

    # --- patch embedding (CLS/pad rows of `patches` are zero; `add` carries
    #     cls + pos[0] on CLS rows, pos[1:] on patch rows, 0 on pad rows) ---
    x = jnp.dot(patches_ref[...], convw_ref[...],
                preferred_element_type=f32) + add_ref[...]           # (TP, D)

    # --- ln_pre ---
    x = _layernorm(x, vecs_ref[_LN_PRE_G], vecs_ref[_LN_PRE_B])

    # --- block-diagonal additive mask, generated in-kernel from the tiny
    #     per-token batch-id vectors (pad rows have unique sentinel ids so they
    #     attend only to themselves -> finite softmax, never read) ---
    neg_mask = jnp.where(bidc_ref[...] == bidr_ref[...], 0.0, -1e30).astype(f32)

    def block(x_in, li, tq):
        """One residual attention block; queries/MLP restricted to rows [:tq]."""
        base = _vec_base(li)

        # --- attention branch ---
        h = _layernorm(x_in, vecs_ref[base + _LN1_G], vecs_ref[base + _LN1_B])
        # fused QKV projection: ONE MXU push instead of 3*H tiny dots.
        # 1/sqrt(HD) is already folded into the q columns host-side.
        qkv_scr[...] = (jnp.dot(h, wqkv_ref[li], preferred_element_type=f32)
                        + bqkv_ref[li])                              # (TP, 3D)
        for hi in range(H):
            q = qkv_scr[0:tq, hi * HD:(hi + 1) * HD]                 # (tq, HD)
            k = qkv_scr[:, D + hi * HD:D + (hi + 1) * HD]            # (TP, HD)
            v = qkv_scr[:, 2 * D + hi * HD:2 * D + (hi + 1) * HD]    # (TP, HD)
            # scores: contract the head dim (no explicit transpose)
            s = lax.dot_general(q, k, (((1,), (1,)), ((), ())),
                                preferred_element_type=f32)          # (tq, TP)
            s = s + neg_mask[0:tq, :]
            s_max = jnp.max(s, axis=-1, keepdims=True)
            e = jnp.exp(s - s_max)
            p = e * pl.reciprocal(jnp.sum(e, axis=-1, keepdims=True),
                                  approx=True)
            # place this head's output at its lane offset for the fused out-proj
            cat_scr[0:tq, hi * HD:(hi + 1) * HD] = jnp.dot(
                p, v, preferred_element_type=f32)                    # (tq, HD)
        # fused output projection: ONE MXU push instead of H per-head dots.
        xq = (x_in[0:tq, :]
              + jnp.dot(cat_scr[0:tq, :], wo_ref[li],
                        preferred_element_type=f32)
              + vecs_ref[base + _OUT_B])

        # --- mlp branch ---
        h2 = _layernorm(xq, vecs_ref[base + _LN2_G], vecs_ref[base + _LN2_B])
        m = jnp.dot(h2, fc1w_ref[li], preferred_element_type=f32) + fc1b_ref[li]
        m = m * jax.nn.sigmoid(1.702 * m)                            # QuickGELU
        m = jnp.dot(m, fc2w_ref[li], preferred_element_type=f32)
        return xq + m + vecs_ref[base + _FC2_B]

    for li in range(L - 1):
        x = block(x, li, TP)

    # --- last layer: queries & MLP only for the B CLS rows (tokens 0..B-1);
    #     keys/values still over all tokens ---
    cls = block(x, L - 1, B)                                         # (B, D)

    # --- head: ln_post on the CLS rows, then output projection ---
    cls = _layernorm(cls, vecs_ref[_LN_POST_G], vecs_ref[_LN_POST_B])
    out_ref[...] = jnp.dot(cls, proj_ref[...], preferred_element_type=f32)


# ---------------- parameter construction (deterministic, synthetic) ----------
def make_params(key):
    ks = iter(jax.random.split(key, 64))
    nrm = lambda shape, s=0.02: (s * jax.random.normal(next(ks), shape)
                                 ).astype(jnp.float32)
    params = {
        "conv_w": nrm((D, C, P, P)),            # conv1 weight, bias=False
        "cls": nrm((D,)),
        "pos": nrm((S, D), 0.01),
        "ln_pre_g": jnp.ones((D,), jnp.float32),
        "ln_pre_b": jnp.zeros((D,), jnp.float32),
        "ln_post_g": jnp.ones((D,), jnp.float32),
        "ln_post_b": jnp.zeros((D,), jnp.float32),
        "proj": nrm((D, E)),
        "layers": [],
    }
    for _ in range(L):
        params["layers"].append({
            "ln1_g": jnp.ones((D,), jnp.float32),
            "ln1_b": jnp.zeros((D,), jnp.float32),
            # in_proj stored [in, out], columns packed q;k;v (open_clip order)
            "qkv_w": nrm((D, 3 * D)),
            "qkv_b": jnp.zeros((3 * D,), jnp.float32),
            "out_w": nrm((D, D)),
            "out_b": jnp.zeros((D,), jnp.float32),
            "ln2_g": jnp.ones((D,), jnp.float32),
            "ln2_b": jnp.zeros((D,), jnp.float32),
            "fc1_w": nrm((D, M)),
            "fc1_b": jnp.zeros((M,), jnp.float32),
            "fc2_w": nrm((M, D)),
            "fc2_b": jnp.zeros((D,), jnp.float32),
        })
    return params


# ---------------- full forward (param repacking in JAX, hot path = 1 kernel) --
@jax.jit
def encode_image(images, params):
    # images: NCHW [B, C, IMG, IMG]
    # Non-overlapping patch extraction == strided conv with kernel=stride=P.
    # TODO(synk): at real resolutions move patch extraction into the kernel
    # (strided / Element-indexed BlockSpec on the NCHW input) instead of this
    # host-side 6-D transpose.
    patches = images.reshape(B, C, G, P, G, P).transpose(0, 2, 4, 1, 3, 5)
    patches = patches.reshape(B * N, CPP)

    # token order: [all CLS | all patches | pad]  (CLS extraction = x[:B])
    patches_full = jnp.concatenate(
        [jnp.zeros((B, CPP), jnp.float32), patches,
         jnp.zeros((TP - T, CPP), jnp.float32)], axis=0)             # (TP, CPP)

    conv_w_flat = params["conv_w"].reshape(D, CPP).T                 # (CPP, D)

    # additive term: CLS rows get (cls + pos[0]); patch rows get pos[1:]; pad 0
    cls_add = (params["cls"] + params["pos"][0])[None, :]            # (1, D)
    add_full = jnp.concatenate(
        [jnp.broadcast_to(cls_add, (B, D)),
         jnp.broadcast_to(params["pos"][1:][None], (B, N, D)).reshape(B * N, D),
         jnp.zeros((TP - T, D), jnp.float32)], axis=0)               # (TP, D)

    # per-token batch ids: CLS rows -> 0..B-1, patch rows -> their batch,
    # pad rows -> unique sentinels (attend only to themselves)
    bid = np.concatenate([np.arange(B), np.repeat(np.arange(B), N),
                          B + np.arange(TP - T)]).astype(np.float32)
    bid_col = jnp.asarray(bid.reshape(TP, 1))
    bid_row = jnp.asarray(bid.reshape(1, TP))

    # ---- pack per-layer parameters into a few stacked VMEM buffers ----------
    scale = 1.0 / math.sqrt(HD)
    qscale = jnp.concatenate([jnp.full((D,), scale, jnp.float32),
                              jnp.ones((2 * D,), jnp.float32)])      # (3D,)
    vec_rows = [params["ln_pre_g"], params["ln_pre_b"],
                params["ln_post_g"], params["ln_post_b"]]
    wqkv, bqkv, wo, fc1w, fc1b, fc2w = [], [], [], [], [], []
    for lp in params["layers"]:
        vec_rows += [lp["ln1_g"], lp["ln1_b"], lp["ln2_g"], lp["ln2_b"],
                     lp["out_b"], lp["fc2_b"]]
        # fold 1/sqrt(HD) into the q columns/bias; keep [q;k;v] column packing
        wqkv.append(lp["qkv_w"] * qscale[None, :])                   # (D, 3D)
        bqkv.append((lp["qkv_b"] * qscale).reshape(1, 3 * D))        # (1, 3D)
        wo.append(lp["out_w"])                                       # (D, D)
        fc1w.append(lp["fc1_w"])
        fc1b.append(lp["fc1_b"].reshape(1, M))
        fc2w.append(lp["fc2_w"])
    vecs = jnp.stack(vec_rows).reshape(NV, 1, D)
    wqkv = jnp.stack(wqkv)                                           # (L, D, 3D)
    bqkv = jnp.stack(bqkv)                                           # (L, 1, 3D)
    wo = jnp.stack(wo)                                               # (L, D, D)
    fc1w = jnp.stack(fc1w)                                           # (L, D, M)
    fc1b = jnp.stack(fc1b)                                           # (L, 1, M)
    fc2w = jnp.stack(fc2w)                                           # (L, M, D)

    return pl.pallas_call(
        _encoder_kernel,
        out_shape=jax.ShapeDtypeStruct((B, E), jnp.float32),
        in_specs=[_VMEM] * 13,
        out_specs=_VMEM,
        scratch_shapes=[pltpu.VMEM((TP, 3 * D), jnp.float32),   # fused QKV result
                        pltpu.VMEM((TP, D), jnp.float32)],      # head-concat buffer
    )(patches_full, conv_w_flat, add_full, bid_col, bid_row, vecs,
      wqkv, bqkv, wo, fc1w, fc1b, fc2w, params["proj"])


if __name__ == "__main__":
    key = jax.random.PRNGKey(0)
    k_img, k_par = jax.random.split(key)
    images = jax.random.normal(k_img, (B, C, IMG, IMG), dtype=jnp.float32)
    params = make_params(k_par)

    feats = encode_image(images, params)
    feats = jax.block_until_ready(feats)

    assert feats.shape == (B, E), feats.shape
    assert bool(jnp.all(jnp.isfinite(feats)))
    print("KERNEL_OK")
</pallas_src>

<mosaic_0001>
module attributes {stable_mosaic.version = 11 : i64} {
  func.func @_encoder_kernel(%arg0: memref<16x192xf32, #tpu.memory_space<vmem>>, %arg1: memref<192x32xf32, #tpu.memory_space<vmem>>, %arg2: memref<16x32xf32, #tpu.memory_space<vmem>>, %arg3: memref<16x1xf32, #tpu.memory_space<vmem>>, %arg4: memref<1x16xf32, #tpu.memory_space<vmem>>, %arg5: memref<16x1x32xf32, #tpu.memory_space<vmem>>, %arg6: memref<2x32x96xf32, #tpu.memory_space<vmem>>, %arg7: memref<2x1x96xf32, #tpu.memory_space<vmem>>, %arg8: memref<2x32x32xf32, #tpu.memory_space<vmem>>, %arg9: memref<2x32x64xf32, #tpu.memory_space<vmem>>, %arg10: memref<2x1x64xf32, #tpu.memory_space<vmem>>, %arg11: memref<2x64x32xf32, #tpu.memory_space<vmem>>, %arg12: memref<32x16xf32, #tpu.memory_space<vmem>>, %arg13: memref<2x16xf32, #tpu.memory_space<vmem>>, %arg14: memref<16x96xf32, #tpu.memory_space<vmem>>, %arg15: memref<16x32xf32, #tpu.memory_space<vmem>>) attributes {dimension_semantics = [], scalar_prefetch = 0 : i64, scratch_operands = 2 : i64, tpu.core_type = #tpu.core_type<tc>} {
    %c0 = arith.constant 0 : index
    %c0_0 = arith.constant 0 : index
    %0 = vector.load %arg0[%c0, %c0_0] : memref<16x192xf32, #tpu.memory_space<vmem>>, vector<16x192xf32>
    %c0_1 = arith.constant 0 : index
    %c0_2 = arith.constant 0 : index
    %1 = vector.load %arg1[%c0_1, %c0_2] : memref<192x32xf32, #tpu.memory_space<vmem>>, vector<192x32xf32>
    %cst = arith.constant dense<0.000000e+00> : vector<16x32xf32>
    %2 = tpu.matmul %0, %1, %cst {dimension_numbers = #tpu.dot_dimension_numbers<[1], [0], [0], [1], [0, 0, 1, 1], [], []>} : vector<16x192xf32>, vector<192x32xf32>, vector<16x32xf32> -> vector<16x32xf32>
    %c0_3 = arith.constant 0 : index
    %c0_4 = arith.constant 0 : index
    %3 = vector.load %arg2[%c0_3, %c0_4] : memref<16x32xf32, #tpu.memory_space<vmem>>, vector<16x32xf32>
    %4 = arith.addf %2, %3 : vector<16x32xf32>
    %c0_5 = arith.constant 0 : index
    %c0_6 = arith.constant 0 : index
    %c0_7 = arith.constant 0 : index
    %5 = vector.load %arg5[%c0_5, %c0_6, %c0_7] : memref<16x1x32xf32, #tpu.memory_space<vmem>>, vector<1x1x32xf32>
    %6 = vector.shape_cast %5 : vector<1x1x32xf32> to vector<1x32xf32>
    %c1 = arith.constant 1 : index
    %c0_8 = arith.constant 0 : index
    %c0_9 = arith.constant 0 : index
    %7 = vector.load %arg5[%c1, %c0_8, %c0_9] : memref<16x1x32xf32, #tpu.memory_space<vmem>>, vector<1x1x32xf32>
    %8 = vector.shape_cast %7 : vector<1x1x32xf32> to vector<1x32xf32>
    %cst_10 = arith.constant dense<0.000000e+00> : vector<16xf32>
    %9 = vector.multi_reduction <add>, %4, %cst_10 [1] : vector<16x32xf32> to vector<16xf32>
    %10 = vector.shape_cast %9 : vector<16xf32> to vector<16x1xf32>
    %cst_11 = arith.constant 3.200000e+01 : f32
    %11 = vector.broadcast %cst_11 : f32 to vector<16x1xf32>
    %12 = arith.divf %10, %11 : vector<16x1xf32>
    %13 = vector.broadcast %12 : vector<16x1xf32> to vector<16x32xf32>
    %14 = arith.subf %4, %13 : vector<16x32xf32>
    %15 = vector.broadcast %12 : vector<16x1xf32> to vector<16x32xf32>
    %16 = arith.subf %4, %15 : vector<16x32xf32>
    %17 = arith.mulf %14, %16 : vector<16x32xf32>
    %cst_12 = arith.constant dense<0.000000e+00> : vector<16xf32>
    %18 = vector.multi_reduction <add>, %17, %cst_12 [1] : vector<16x32xf32> to vector<16xf32>
    %19 = vector.shape_cast %18 : vector<16xf32> to vector<16x1xf32>
    %cst_13 = arith.constant 3.200000e+01 : f32
    %20 = vector.broadcast %cst_13 : f32 to vector<16x1xf32>
    %21 = arith.divf %19, %20 : vector<16x1xf32>
    %22 = vector.broadcast %12 : vector<16x1xf32> to vector<16x32xf32>
    %23 = arith.subf %4, %22 : vector<16x32xf32>
    %cst_14 = arith.constant 9.99999974E-6 : f32
    %24 = vector.broadcast %cst_14 : f32 to vector<16x1xf32>
    %25 = arith.addf %21, %24 : vector<16x1xf32>
    %26 = math.rsqrt %25 : vector<16x1xf32>
    %27 = vector.broadcast %26 : vector<16x1xf32> to vector<16x32xf32>
    %28 = arith.mulf %23, %27 : vector<16x32xf32>
    %29 = vector.broadcast %6 : vector<1x32xf32> to vector<16x32xf32>
    %30 = arith.mulf %28, %29 : vector<16x32xf32>
    %31 = vector.broadcast %8 : vector<1x32xf32> to vector<16x32xf32>
    %32 = arith.addf %30, %31 : vector<16x32xf32>
    %c0_15 = arith.constant 0 : index
    %c0_16 = arith.constant 0 : index
    %33 = vector.load %arg3[%c0_15, %c0_16] : memref<16x1xf32, #tpu.memory_space<vmem>>, vector<16x1xf32>
    %c0_17 = arith.constant 0 : index
    %c0_18 = arith.constant 0 : index
    %34 = vector.load %arg4[%c0_17, %c0_18] : memref<1x16xf32, #tpu.memory_space<vmem>>, vector<1x16xf32>
    %35 = vector.broadcast %33 : vector<16x1xf32> to vector<16x16xf32>
    %36 = vector.broadcast %34 : vector<1x16xf32> to vector<16x16xf32>
    %37 = arith.cmpf oeq, %35, %36 : vector<16x16xf32>
    %cst_19 = arith.constant 0.000000e+00 : f32
    %cst_20 = arith.constant -1.000000e+30 : f32
    %38 = vector.broadcast %cst_19 : f32 to vector<16x16xf32>
    %39 = vector.broadcast %cst_20 : f32 to vector<16x16xf32>
    %40 = arith.select %37, %38, %39 : vector<16x16xi1>, vector<16x16xf32>
    %c4 = arith.constant 4 : index
    %c0_21 = arith.constant 0 : index
    %c0_22 = arith.constant 0 : index
    %41 = vector.load %arg5[%c4, %c0_21, %c0_22] : memref<16x1x32xf32, #tpu.memory_space<vmem>>, vector<1x1x32xf32>
    %42 = vector.shape_cast %41 : vector<1x1x32xf32> to vector<1x32xf32>
    %c5 = arith.constant 5 : index
    %c0_23 = arith.constant 0 : index
    %c0_24 = arith.constant 0 : index
    %43 = vector.load %arg5[%c5, %c0_23, %c0_24] : memref<16x1x32xf32, #tpu.memory_space<vmem>>, vector<1x1x32xf32>
    %44 = vector.shape_cast %43 : vector<1x1x32xf32> to vector<1x32xf32>
    %cst_25 = arith.constant dense<0.000000e+00> : vector<16xf32>
    %45 = vector.multi_reduction <add>, %32, %cst_25 [1] : vector<16x32xf32> to vector<16xf32>
    %46 = vector.shape_cast %45 : vector<16xf32> to vector<16x1xf32>
    %cst_26 = arith.constant 3.200000e+01 : f32
    %47 = vector.broadcast %cst_26 : f32 to vector<16x1xf32>
    %48 = arith.divf %46, %47 : vector<16x1xf32>
    %49 = vector.broadcast %48 : vector<16x1xf32> to vector<16x32xf32>
    %50 = arith.subf %32, %49 : vector<16x32xf32>
    %51 = vector.broadcast %48 : vector<16x1xf32> to vector<16x32xf32>
    %52 = arith.subf %32, %51 : vector<16x32xf32>
    %53 = arith.mulf %50, %52 : vector<16x32xf32>
    %cst_27 = arith.constant dense<0.000000e+00> : vector<16xf32>
    %54 = vector.multi_reduction <add>, %53, %cst_27 [1] : vector<16x32xf32> to vector<16xf32>
    %55 = vector.shape_cast %54 : vector<16xf32> to vector<16x1xf32>
    %cst_28 = arith.constant 3.200000e+01 : f32
    %56 = vector.broadcast %cst_28 : f32 to vector<16x1xf32>
    %57 = arith.divf %55, %56 : vector<16x1xf32>
    %58 = vector.broadcast %48 : vector<16x1xf32> to vector<16x32xf32>
    %59 = arith.subf %32, %58 : vector<16x32xf32>
    %cst_29 = arith.constant 9.99999974E-6 : f32
    %60 = vector.broadcast %cst_29 : f32 to vector<16x1xf32>
    %61 = arith.addf %57, %60 : vector<16x1xf32>
    %62 = math.rsqrt %61 : vector<16x1xf32>
    %63 = vector.broadcast %62 : vector<16x1xf32> to vector<16x32xf32>
    %64 = arith.mulf %59, %63 : vector<16x32xf32>
    %65 = vector.broadcast %42 : vector<1x32xf32> to vector<16x32xf32>
    %66 = arith.mulf %64, %65 : vector<16x32xf32>
    %67 = vector.broadcast %44 : vector<1x32xf32> to vector<16x32xf32>
    %68 = arith.addf %66, %67 : vector<16x32xf32>
    %c0_30 = arith.constant 0 : index
    %c0_31 = arith.constant 0 : index
    %c0_32 = arith.constant 0 : index
    %69 = vector.load %arg6[%c0_30, %c0_31, %c0_32] : memref<2x32x96xf32, #tpu.memory_space<vmem>>, vector<1x32x96xf32>
    %70 = vector.shape_cast %69 : vector<1x32x96xf32> to vector<32x96xf32>
    %cst_33 = arith.constant dense<0.000000e+00> : vector<16x96xf32>
    %71 = tpu.matmul %68, %70, %cst_33 {dimension_numbers = #tpu.dot_dimension_numbers<[1], [0], [0], [1], [0, 0, 1, 1], [], []>} : vector<16x32xf32>, vector<32x96xf32>, vector<16x96xf32> -> vector<16x96xf32>
    %c0_34 = arith.constant 0 : index
    %c0_35 = arith.constant 0 : index
    %c0_36 = arith.constant 0 : index
    %72 = vector.load %arg7[%c0_34, %c0_35, %c0_36] : memref<2x1x96xf32, #tpu.memory_space<vmem>>, vector<1x1x96xf32>
    %73 = vector.shape_cast %72 : vector<1x1x96xf32> to vector<1x96xf32>
    %74 = vector.broadcast %73 : vector<1x96xf32> to vector<16x96xf32>
    %75 = arith.addf %71, %74 : vector<16x96xf32>
    %c0_37 = arith.constant 0 : index
    %c0_38 = arith.constant 0 : index
    %76 = vector.load %arg14[%c0_37, %c0_38] : memref<16x96xf32, #tpu.memory_space<vmem>>, vector<16x96xf32>
    tpu.vector_store %arg14[%c0_37, %c0_38], %75 {strides = array<i32>} : memref<16x96xf32, #tpu.memory_space<vmem>>, vector<16x96xf32>,
    %c0_39 = arith.constant 0 : index
    %c0_40 = arith.constant 0 : index
    %77 = vector.load %arg14[%c0_39, %c0_40] : memref<16x96xf32, #tpu.memory_space<vmem>>, vector<16x8xf32>
    %c0_41 = arith.constant 0 : index
    %c32 = arith.constant 32 : index
    %78 = vector.load %arg14[%c0_41, %c32] : memref<16x96xf32, #tpu.memory_space<vmem>>, vector<16x8xf32>
    %c0_42 = arith.constant 0 : index
    %c64 = arith.constant 64 : index
    %79 = vector.load %arg14[%c0_42, %c64] : memref<16x96xf32, #tpu.memory_space<vmem>>, vector<16x8xf32>
    %cst_43 = arith.constant dense<0.000000e+00> : vector<16x16xf32>
    %80 = tpu.matmul %77, %78, %cst_43 {dimension_numbers = #tpu.dot_dimension_numbers<[1], [1], [0], [0], [0, 0, 1, 0], [], []>} : vector<16x8xf32>, vector<16x8xf32>, vector<16x16xf32> -> vector<16x16xf32>
    %81 = arith.addf %80, %40 : vector<16x16xf32>
    %cst_44 = arith.constant dense<0xFF800000> : vector<16xf32>
    %82 = vector.multi_reduction <maximumf>, %81, %cst_44 [1] : vector<16x16xf32> to vector<16xf32>
    %83 = vector.shape_cast %82 : vector<16xf32> to vector<16x1xf32>
    %84 = vector.broadcast %83 : vector<16x1xf32> to vector<16x16xf32>
    %85 = arith.subf %81, %84 : vector<16x16xf32>
    %86 = math.exp %85 : vector<16x16xf32>
    %cst_45 = arith.constant dense<0.000000e+00> : vector<16xf32>
    %87 = vector.multi_reduction <add>, %86, %cst_45 [1] : vector<16x16xf32> to vector<16xf32>
    %88 = vector.shape_cast %87 : vector<16xf32> to vector<16x1xf32>
    %89 = tpu.reciprocal %88 {approx = true} : vector<16x1xf32> -> vector<16x1xf32>
    %90 = vector.broadcast %89 : vector<16x1xf32> to vector<16x16xf32>
    %91 = arith.mulf %86, %90 : vector<16x16xf32>
    %cst_46 = arith.constant dense<0.000000e+00> : vector<16x8xf32>
    %92 = tpu.matmul %91, %79, %cst_46 {dimension_numbers = #tpu.dot_dimension_numbers<[1], [0], [0], [1], [0, 0, 1, 1], [], []>} : vector<16x16xf32>, vector<16x8xf32>, vector<16x8xf32> -> vector<16x8xf32>
    %c0_47 = arith.constant 0 : index
    %c0_48 = arith.constant 0 : index
    %93 = vector.load %arg15[%c0_47, %c0_48] : memref<16x32xf32, #tpu.memory_space<vmem>>, vector<16x8xf32>
    tpu.vector_store %arg15[%c0_47, %c0_48], %92 {strides = array<i32>} : memref<16x32xf32, #tpu.memory_space<vmem>>, vector<16x8xf32>,
    %c0_49 = arith.constant 0 : index
    %c8 = arith.constant 8 : index
    %94 = vector.load %arg14[%c0_49, %c8] : memref<16x96xf32, #tpu.memory_space<vmem>>, vector<16x8xf32>
    %c0_50 = arith.constant 0 : index
    %c40 = arith.constant 40 : index
    %95 = vector.load %arg14[%c0_50, %c40] : memref<16x96xf32, #tpu.memory_space<vmem>>, vector<16x8xf32>
    %c0_51 = arith.constant 0 : index
    %c72 = arith.constant 72 : index
    %96 = vector.load %arg14[%c0_51, %c72] : memref<16x96xf32, #tpu.memory_space<vmem>>, vector<16x8xf32>
    %cst_52 = arith.constant dense<0.000000e+00> : vector<16x16xf32>
    %97 = tpu.matmul %94, %95, %cst_52 {dimension_numbers = #tpu.dot_dimension_numbers<[1], [1], [0], [0], [0, 0, 1, 0], [], []>} : vector<16x8xf32>, vector<16x8xf32>, vector<16x16xf32> -> vector<16x16xf32>
    %98 = arith.addf %97, %40 : vector<16x16xf32>
    %cst_53 = arith.constant dense<0xFF800000> : vector<16xf32>
    %99 = vector.multi_reduction <maximumf>, %98, %cst_53 [1] : vector<16x16xf32> to vector<16xf32>
    %100 = vector.shape_cast %99 : vector<16xf32> to vector<16x1xf32>
    %101 = vector.broadcast %100 : vector<16x1xf32> to vector<16x16xf32>
    %102 = arith.subf %98, %101 : vector<16x16xf32>
    %103 = math.exp %102 : vector<16x16xf32>
    %cst_54 = arith.constant dense<0.000000e+00> : vector<16xf32>
    %104 = vector.multi_reduction <add>, %103, %cst_54 [1] : vector<16x16xf32> to vector<16xf32>
    %105 = vector.shape_cast %104 : vector<16xf32> to vector<16x1xf32>
    %106 = tpu.reciprocal %105 {approx = true} : vector<16x1xf32> -> vector<16x1xf32>
    %107 = vector.broadcast %106 : vector<16x1xf32> to vector<16x16xf32>
    %108 = arith.mulf %103, %107 : vector<16x16xf32>
    %cst_55 = arith.constant dense<0.000000e+00> : vector<16x8xf32>
    %109 = tpu.matmul %108, %96, %cst_55 {dimension_numbers = #tpu.dot_dimension_numbers<[1], [0], [0], [1], [0, 0, 1, 1], [], []>} : vector<16x16xf32>, vector<16x8xf32>, vector<16x8xf32> -> vector<16x8xf32>
    %c0_56 = arith.constant 0 : index
    %c8_57 = arith.constant 8 : index
    %110 = vector.load %arg15[%c0_56, %c8_57] : memref<16x32xf32, #tpu.memory_space<vmem>>, vector<16x8xf32>
    tpu.vector_store %arg15[%c0_56, %c8_57], %109 {strides = array<i32>} : memref<16x32xf32, #tpu.memory_space<vmem>>, vector<16x8xf32>,
    %c0_58 = arith.constant 0 : index
    %c16 = arith.constant 16 : index
    %111 = vector.load %arg14[%c0_58, %c16] : memref<16x96xf32, #tpu.memory_space<vmem>>, vector<16x8xf32>
    %c0_59 = arith.constant 0 : index
    %c48 = arith.constant 48 : index
    %112 = vector.load %arg14[%c0_59, %c48] : memref<16x96xf32, #tpu.memory_space<vmem>>, vector<16x8xf32>
    %c0_60 = arith.constant 0 : index
    %c80 = arith.constant 80 : index
    %113 = vector.load %arg14[%c0_60, %c80] : memref<16x96xf32, #tpu.memory_space<vmem>>, vector<16x8xf32>
    %cst_61 = arith.constant dense<0.000000e+00> : vector<16x16xf32>
    %114 = tpu.matmul %111, %112, %cst_61 {dimension_numbers = #tpu.dot_dimension_numbers<[1], [1], [0], [0], [0, 0, 1, 0], [], []>} : vector<16x8xf32>, vector<16x8xf32>, vector<16x16xf32> -> vector<16x16xf32>
    %115 = arith.addf %114, %40 : vector<16x16xf32>
    %cst_62 = arith.constant dense<0xFF800000> : vector<16xf32>
    %116 = vector.multi_reduction <maximumf>, %115, %cst_62 [1] : vector<16x16xf32> to vector<16xf32>
    %117 = vector.shape_cast %116 : vector<16xf32> to vector<16x1xf32>
    %118 = vector.broadcast %117 : vector<16x1xf32> to vector<16x16xf32>
    %119 = arith.subf %115, %118 : vector<16x16xf32>
    %120 = math.exp %119 : vector<16x16xf32>
    %cst_63 = arith.constant dense<0.000000e+00> : vector<16xf32>
    %121 = vector.multi_reduction <add>, %120, %cst_63 [1] : vector<16x16xf32> to vector<16xf32>
    %122 = vector.shape_cast %121 : vector<16xf32> to vector<16x1xf32>
    %123 = tpu.reciprocal %122 {approx = true} : vector<16x1xf32> -> vector<16x1xf32>
    %124 = vector.broadcast %123 : vector<16x1xf32> to vector<16x16xf32>
    %125 = arith.mulf %120, %124 : vector<16x16xf32>
    %cst_64 = arith.constant dense<0.000000e+00> : vector<16x8xf32>
    %126 = tpu.matmul %125, %113, %cst_64 {dimension_numbers = #tpu.dot_dimension_numbers<[1], [0], [0], [1], [0, 0, 1, 1], [], []>} : vector<16x16xf32>, vector<16x8xf32>, vector<16x8xf32> -> vector<16x8xf32>
    %c0_65 = arith.constant 0 : index
    %c16_66 = arith.constant 16 : index
    %127 = vector.load %arg15[%c0_65, %c16_66] : memref<16x32xf32, #tpu.memory_space<vmem>>, vector<16x8xf32>
    tpu.vector_store %arg15[%c0_65, %c16_66], %126 {strides = array<i32>} : memref<16x32xf32, #tpu.memory_space<vmem>>, vector<16x8xf32>,
    %c0_67 = arith.constant 0 : index
    %c24 = arith.constant 24 : index
    %128 = vector.load %arg14[%c0_67, %c24] : memref<16x96xf32, #tpu.memory_space<vmem>>, vector<16x8xf32>
    %c0_68 = arith.constant 0 : index
    %c56 = arith.constant 56 : index
    %129 = vector.load %arg14[%c0_68, %c56] : memref<16x96xf32, #tpu.memory_space<vmem>>, vector<16x8xf32>
    %c0_69 = arith.constant 0 : index
    %c88 = arith.constant 88 : index
    %130 = vector.load %arg14[%c0_69, %c88] : memref<16x96xf32, #tpu.memory_space<vmem>>, vector<16x8xf32>
    %cst_70 = arith.constant dense<0.000000e+00> : vector<16x16xf32>
    %131 = tpu.matmul %128, %129, %cst_70 {dimension_numbers = #tpu.dot_dimension_numbers<[1], [1], [0], [0], [0, 0, 1, 0], [], []>} : vector<16x8xf32>, vector<16x8xf32>, vector<16x16xf32> -> vector<16x16xf32>
    %132 = arith.addf %131, %40 : vector<16x16xf32>
    %cst_71 = arith.constant dense<0xFF800000> : vector<16xf32>
    %133 = vector.multi_reduction <maximumf>, %132, %cst_71 [1] : vector<16x16xf32> to vector<16xf32>
    %134 = vector.shape_cast %133 : vector<16xf32> to vector<16x1xf32>
    %135 = vector.broadcast %134 : vector<16x1xf32> to vector<16x16xf32>
    %136 = arith.subf %132, %135 : vector<16x16xf32>
    %137 = math.exp %136 : vector<16x16xf32>
    %cst_72 = arith.constant dense<0.000000e+00> : vector<16xf32>
    %138 = vector.multi_reduction <add>, %137, %cst_72 [1] : vector<16x16xf32> to vector<16xf32>
    %139 = vector.shape_cast %138 : vector<16xf32> to vector<16x1xf32>
    %140 = tpu.reciprocal %139 {approx = true} : vector<16x1xf32> -> vector<16x1xf32>
    %141 = vector.broadcast %140 : vector<16x1xf32> to vector<16x16xf32>
    %142 = arith.mulf %137, %141 : vector<16x16xf32>
    %cst_73 = arith.constant dense<0.000000e+00> : vector<16x8xf32>
    %143 = tpu.matmul %142, %130, %cst_73 {dimension_numbers = #tpu.dot_dimension_numbers<[1], [0], [0], [1], [0, 0, 1, 1], [], []>} : vector<16x16xf32>, vector<16x8xf32>, vector<16x8xf32> -> vector<16x8xf32>
    %c0_74 = arith.constant 0 : index
    %c24_75 = arith.constant 24 : index
    %144 = vector.load %arg15[%c0_74, %c24_75] : memref<16x32xf32, #tpu.memory_space<vmem>>, vector<16x8xf32>
    tpu.vector_store %arg15[%c0_74, %c24_75], %143 {strides = array<i32>} : memref<16x32xf32, #tpu.memory_space<vmem>>, vector<16x8xf32>,
    %c0_76 = arith.constant 0 : index
    %c0_77 = arith.constant 0 : index
    %145 = vector.load %arg15[%c0_76, %c0_77] : memref<16x32xf32, #tpu.memory_space<vmem>>, vector<16x32xf32>
    %c0_78 = arith.constant 0 : index
    %c0_79 = arith.constant 0 : index
    %c0_80 = arith.constant 0 : index
    %146 = vector.load %arg8[%c0_78, %c0_79, %c0_80] : memref<2x32x32xf32, #tpu.memory_space<vmem>>, vector<1x32x32xf32>
    %147 = vector.shape_cast %146 : vector<1x32x32xf32> to vector<32x32xf32>
    %cst_81 = arith.constant dense<0.000000e+00> : vector<16x32xf32>
    %148 = tpu.matmul %145, %147, %cst_81 {dimension_numbers = #tpu.dot_dimension_numbers<[1], [0], [0], [1], [0, 0, 1, 1], [], []>} : vector<16x32xf32>, vector<32x32xf32>, vector<16x32xf32> -> vector<16x32xf32>
    %149 = arith.addf %32, %148 : vector<16x32xf32>
    %c8_82 = arith.constant 8 : index
    %c0_83 = arith.constant 0 : index
    %c0_84 = arith.constant 0 : index
    %150 = vector.load %arg5[%c8_82, %c0_83, %c0_84] : memref<16x1x32xf32, #tpu.memory_space<vmem>>, vector<1x1x32xf32>
    %151 = vector.shape_cast %150 : vector<1x1x32xf32> to vector<1x32xf32>
    %152 = vector.broadcast %151 : vector<1x32xf32> to vector<16x32xf32>
    %153 = arith.addf %149, %152 : vector<16x32xf32>
    %c6 = arith.constant 6 : index
    %c0_85 = arith.constant 0 : index
    %c0_86 = arith.constant 0 : index
    %154 = vector.load %arg5[%c6, %c0_85, %c0_86] : memref<16x1x32xf32, #tpu.memory_space<vmem>>, vector<1x1x32xf32>
    %155 = vector.shape_cast %154 : vector<1x1x32xf32> to vector<1x32xf32>
    %c7 = arith.constant 7 : index
    %c0_87 = arith.constant 0 : index
    %c0_88 = arith.constant 0 : index
    %156 = vector.load %arg5[%c7, %c0_87, %c0_88] : memref<16x1x32xf32, #tpu.memory_space<vmem>>, vector<1x1x32xf32>
    %157 = vector.shape_cast %156 : vector<1x1x32xf32> to vector<1x32xf32>
    %cst_89 = arith.constant dense<0.000000e+00> : vector<16xf32>
    %158 = vector.multi_reduction <add>, %153, %cst_89 [1] : vector<16x32xf32> to vector<16xf32>
    %159 = vector.shape_cast %158 : vector<16xf32> to vector<16x1xf32>
    %cst_90 = arith.constant 3.200000e+01 : f32
    %160 = vector.broadcast %cst_90 : f32 to vector<16x1xf32>
    %161 = arith.divf %159, %160 : vector<16x1xf32>
    %162 = vector.broadcast %161 : vector<16x1xf32> to vector<16x32xf32>
    %163 = arith.subf %153, %162 : vector<16x32xf32>
    %164 = vector.broadcast %161 : vector<16x1xf32> to vector<16x32xf32>
    %165 = arith.subf %153, %164 : vector<16x32xf32>
    %166 = arith.mulf %163, %165 : vector<16x32xf32>
    %cst_91 = arith.constant dense<0.000000e+00> : vector<16xf32>
    %167 = vector.multi_reduction <add>, %166, %cst_91 [1] : vector<16x32xf32> to vector<16xf32>
    %168 = vector.shape_cast %167 : vector<16xf32> to vector<16x1xf32>
    %cst_92 = arith.constant 3.200000e+01 : f32
    %169 = vector.broadcast %cst_92 : f32 to vector<16x1xf32>
    %170 = arith.divf %168, %169 : vector<16x1xf32>
    %171 = vector.broadcast %161 : vector<16x1xf32> to vector<16x32xf32>
    %172 = arith.subf %153, %171 : vector<16x32xf32>
    %cst_93 = arith.constant 9.99999974E-6 : f32
    %173 = vector.broadcast %cst_93 : f32 to vector<16x1xf32>
    %174 = arith.addf %170, %173 : vector<16x1xf32>
    %175 = math.rsqrt %174 : vector<16x1xf32>
    %176 = vector.broadcast %175 : vector<16x1xf32> to vector<16x32xf32>
    %177 = arith.mulf %172, %176 : vector<16x32xf32>
    %178 = vector.broadcast %155 : vector<1x32xf32> to vector<16x32xf32>
    %179 = arith.mulf %177, %178 : vector<16x32xf32>
    %180 = vector.broadcast %157 : vector<1x32xf32> to vector<16x32xf32>
    %181 = arith.addf %179, %180 : vector<16x32xf32>
    %c0_94 = arith.constant 0 : index
    %c0_95 = arith.constant 0 : index
    %c0_96 = arith.constant 0 : index
    %182 = vector.load %arg9[%c0_94, %c0_95, %c0_96] : memref<2x32x64xf32, #tpu.memory_space<vmem>>, vector<1x32x64xf32>
    %183 = vector.shape_cast %182 : vector<1x32x64xf32> to vector<32x64xf32>
    %cst_97 = arith.constant dense<0.000000e+00> : vector<16x64xf32>
    %184 = tpu.matmul %181, %183, %cst_97 {dimension_numbers = #tpu.dot_dimension_numbers<[1], [0], [0], [1], [0, 0, 1, 1], [], []>} : vector<16x32xf32>, vector<32x64xf32>, vector<16x64xf32> -> vector<16x64xf32>
    %c0_98 = arith.constant 0 : index
    %c0_99 = arith.constant 0 : index
    %c0_100 = arith.constant 0 : index
    %185 = vector.load %arg10[%c0_98, %c0_99, %c0_100] : memref<2x1x64xf32, #tpu.memory_space<vmem>>, vector<1x1x64xf32>
    %186 = vector.shape_cast %185 : vector<1x1x64xf32> to vector<1x64xf32>
    %187 = vector.broadcast %186 : vector<1x64xf32> to vector<16x64xf32>
    %188 = arith.addf %184, %187 : vector<16x64xf32>
    %cst_101 = arith.constant 1.702000e+00 : f32
    %189 = vector.broadcast %cst_101 : f32 to vector<16x64xf32>
    %190 = arith.mulf %189, %188 : vector<16x64xf32>
    %191 = arith.negf %190 : vector<16x64xf32>
    %192 = math.exp %191 : vector<16x64xf32>
    %cst_102 = arith.constant 1.000000e+00 : f32
    %193 = vector.broadcast %cst_102 : f32 to vector<16x64xf32>
    %194 = arith.addf %193, %192 : vector<16x64xf32>
    %195 = arith.divf %193, %194 : vector<16x64xf32>
    %196 = arith.mulf %188, %195 : vector<16x64xf32>
    %c0_103 = arith.constant 0 : index
    %c0_104 = arith.constant 0 : index
    %c0_105 = arith.constant 0 : index
    %197 = vector.load %arg11[%c0_103, %c0_104, %c0_105] : memref<2x64x32xf32, #tpu.memory_space<vmem>>, vector<1x64x32xf32>
    %198 = vector.shape_cast %197 : vector<1x64x32xf32> to vector<64x32xf32>
    %cst_106 = arith.constant dense<0.000000e+00> : vector<16x32xf32>
    %199 = tpu.matmul %196, %198, %cst_106 {dimension_numbers = #tpu.dot_dimension_numbers<[1], [0], [0], [1], [0, 0, 1, 1], [], []>} : vector<16x64xf32>, vector<64x32xf32>, vector<16x32xf32> -> vector<16x32xf32>
    %200 = arith.addf %153, %199 : vector<16x32xf32>
    %c9 = arith.constant 9 : index
    %c0_107 = arith.constant 0 : index
    %c0_108 = arith.constant 0 : index
    %201 = vector.load %arg5[%c9, %c0_107, %c0_108] : memref<16x1x32xf32, #tpu.memory_space<vmem>>, vector<1x1x32xf32>
    %202 = vector.shape_cast %201 : vector<1x1x32xf32> to vector<1x32xf32>
    %203 = vector.broadcast %202 : vector<1x32xf32> to vector<16x32xf32>
    %204 = arith.addf %200, %203 : vector<16x32xf32>
    %c10 = arith.constant 10 : index
    %c0_109 = arith.constant 0 : index
    %c0_110 = arith.constant 0 : index
    %205 = vector.load %arg5[%c10, %c0_109, %c0_110] : memref<16x1x32xf32, #tpu.memory_space<vmem>>, vector<1x1x32xf32>
    %206 = vector.shape_cast %205 : vector<1x1x32xf32> to vector<1x32xf32>
    %c11 = arith.constant 11 : index
    %c0_111 = arith.constant 0 : index
    %c0_112 = arith.constant 0 : index
    %207 = vector.load %arg5[%c11, %c0_111, %c0_112] : memref<16x1x32xf32, #tpu.memory_space<vmem>>, vector<1x1x32xf32>
    %208 = vector.shape_cast %207 : vector<1x1x32xf32> to vector<1x32xf32>
    %cst_113 = arith.constant dense<0.000000e+00> : vector<16xf32>
    %209 = vector.multi_reduction <add>, %204, %cst_113 [1] : vector<16x32xf32> to vector<16xf32>
    %210 = vector.shape_cast %209 : vector<16xf32> to vector<16x1xf32>
    %cst_114 = arith.constant 3.200000e+01 : f32
    %211 = vector.broadcast %cst_114 : f32 to vector<16x1xf32>
    %212 = arith.divf %210, %211 : vector<16x1xf32>
    %213 = vector.broadcast %212 : vector<16x1xf32> to vector<16x32xf32>
    %214 = arith.subf %204, %213 : vector<16x32xf32>
    %215 = vector.broadcast %212 : vector<16x1xf32> to vector<16x32xf32>
    %216 = arith.subf %204, %215 : vector<16x32xf32>
    %217 = arith.mulf %214, %216 : vector<16x32xf32>
    %cst_115 = arith.constant dense<0.000000e+00> : vector<16xf32>
    %218 = vector.multi_reduction <add>, %217, %cst_115 [1] : vector<16x32xf32> to vector<16xf32>
    %219 = vector.shape_cast %218 : vector<16xf32> to vector<16x1xf32>
    %cst_116 = arith.constant 3.200000e+01 : f32
    %220 = vector.broadcast %cst_116 : f32 to vector<16x1xf32>
    %221 = arith.divf %219, %220 : vector<16x1xf32>
    %222 = vector.broadcast %212 : vector<16x1xf32> to vector<16x32xf32>
    %223 = arith.subf %204, %222 : vector<16x32xf32>
    %cst_117 = arith.constant 9.99999974E-6 : f32
    %224 = vector.broadcast %cst_117 : f32 to vector<16x1xf32>
    %225 = arith.addf %221, %224 : vector<16x1xf32>
    %226 = math.rsqrt %225 : vector<16x1xf32>
    %227 = vector.broadcast %226 : vector<16x1xf32> to vector<16x32xf32>
    %228 = arith.mulf %223, %227 : vector<16x32xf32>
    %229 = vector.broadcast %206 : vector<1x32xf32> to vector<16x32xf32>
    %230 = arith.mulf %228, %229 : vector<16x32xf32>
    %231 = vector.broadcast %208 : vector<1x32xf32> to vector<16x32xf32>
    %232 = arith.addf %230, %231 : vector<16x32xf32>
    %c1_118 = arith.constant 1 : index
    %c0_119 = arith.constant 0 : index
    %c0_120 = arith.constant 0 : index
    %233 = vector.load %arg6[%c1_118, %c0_119, %c0_120] : memref<2x32x96xf32, #tpu.memory_space<vmem>>, vector<1x32x96xf32>
    %234 = vector.shape_cast %233 : vector<1x32x96xf32> to vector<32x96xf32>
    %cst_121 = arith.constant dense<0.000000e+00> : vector<16x96xf32>
    %235 = tpu.matmul %232, %234, %cst_121 {dimension_numbers = #tpu.dot_dimension_numbers<[1], [0], [0], [1], [0, 0, 1, 1], [], []>} : vector<16x32xf32>, vector<32x96xf32>, vector<16x96xf32> -> vector<16x96xf32>
    %c1_122 = arith.constant 1 : index
    %c0_123 = arith.constant 0 : index
    %c0_124 = arith.constant 0 : index
    %236 = vector.load %arg7[%c1_122, %c0_123, %c0_124] : memref<2x1x96xf32, #tpu.memory_space<vmem>>, vector<1x1x96xf32>
    %237 = vector.shape_cast %236 : vector<1x1x96xf32> to vector<1x96xf32>
    %238 = vector.broadcast %237 : vector<1x96xf32> to vector<16x96xf32>
    %239 = arith.addf %235, %238 : vector<16x96xf32>
    %c0_125 = arith.constant 0 : index
    %c0_126 = arith.constant 0 : index
    %240 = vector.load %arg14[%c0_125, %c0_126] : memref<16x96xf32, #tpu.memory_space<vmem>>, vector<16x96xf32>
    tpu.vector_store %arg14[%c0_125, %c0_126], %239 {strides = array<i32>} : memref<16x96xf32, #tpu.memory_space<vmem>>, vector<16x96xf32>,
    %c0_127 = arith.constant 0 : index
    %c0_128 = arith.constant 0 : index
    %241 = vector.load %arg14[%c0_127, %c0_128] : memref<16x96xf32, #tpu.memory_space<vmem>>, vector<2x8xf32>
    %c0_129 = arith.constant 0 : index
    %c32_130 = arith.constant 32 : index
    %242 = vector.load %arg14[%c0_129, %c32_130] : memref<16x96xf32, #tpu.memory_space<vmem>>, vector<16x8xf32>
    %c0_131 = arith.constant 0 : index
    %c64_132 = arith.constant 64 : index
    %243 = vector.load %arg14[%c0_131, %c64_132] : memref<16x96xf32, #tpu.memory_space<vmem>>, vector<16x8xf32>
    %cst_133 = arith.constant dense<0.000000e+00> : vector<2x16xf32>
    %244 = tpu.matmul %241, %242, %cst_133 {dimension_numbers = #tpu.dot_dimension_numbers<[1], [1], [0], [0], [0, 0, 1, 0], [], []>} : vector<2x8xf32>, vector<16x8xf32>, vector<2x16xf32> -> vector<2x16xf32>
    %245 = vector.extract_strided_slice %40 {offsets = [0, 0], sizes = [2, 16], strides = [1, 1]} : vector<16x16xf32> to vector<2x16xf32>
    %246 = arith.addf %244, %245 : vector<2x16xf32>
    %cst_134 = arith.constant dense<0xFF800000> : vector<2xf32>
    %247 = vector.multi_reduction <maximumf>, %246, %cst_134 [1] : vector<2x16xf32> to vector<2xf32>
    %248 = vector.shape_cast %247 : vector<2xf32> to vector<2x1xf32>
    %249 = vector.broadcast %248 : vector<2x1xf32> to vector<2x16xf32>
    %250 = arith.subf %246, %249 : vector<2x16xf32>
    %251 = math.exp %250 : vector<2x16xf32>
    %cst_135 = arith.constant dense<0.000000e+00> : vector<2xf32>
    %252 = vector.multi_reduction <add>, %251, %cst_135 [1] : vector<2x16xf32> to vector<2xf32>
    %253 = vector.shape_cast %252 : vector<2xf32> to vector<2x1xf32>
    %254 = tpu.reciprocal %253 {approx = true} : vector<2x1xf32> -> vector<2x1xf32>
    %255 = vector.broadcast %254 : vector<2x1xf32> to vector<2x16xf32>
    %256 = arith.mulf %251, %255 : vector<2x16xf32>
    %cst_136 = arith.constant dense<0.000000e+00> : vector<2x8xf32>
    %257 = tpu.matmul %256, %243, %cst_136 {dimension_numbers = #tpu.dot_dimension_numbers<[1], [0], [0], [1], [0, 0, 1, 1], [], []>} : vector<2x16xf32>, vector<16x8xf32>, vector<2x8xf32> -> vector<2x8xf32>
    %c0_137 = arith.constant 0 : index
    %c0_138 = arith.constant 0 : index
    %258 = vector.load %arg15[%c0_137, %c0_138] : memref<16x32xf32, #tpu.memory_space<vmem>>, vector<2x8xf32>
    tpu.vector_store %arg15[%c0_137, %c0_138], %257 {strides = array<i32>} : memref<16x32xf32, #tpu.memory_space<vmem>>, vector<2x8xf32>,
    %c0_139 = arith.constant 0 : index
    %c8_140 = arith.constant 8 : index
    %259 = vector.load %arg14[%c0_139, %c8_140] : memref<16x96xf32, #tpu.memory_space<vmem>>, vector<2x8xf32>
    %c0_141 = arith.constant 0 : index
    %c40_142 = arith.constant 40 : index
    %260 = vector.load %arg14[%c0_141, %c40_142] : memref<16x96xf32, #tpu.memory_space<vmem>>, vector<16x8xf32>
    %c0_143 = arith.constant 0 : index
    %c72_144 = arith.constant 72 : index
    %261 = vector.load %arg14[%c0_143, %c72_144] : memref<16x96xf32, #tpu.memory_space<vmem>>, vector<16x8xf32>
    %cst_145 = arith.constant dense<0.000000e+00> : vector<2x16xf32>
    %262 = tpu.matmul %259, %260, %cst_145 {dimension_numbers = #tpu.dot_dimension_numbers<[1], [1], [0], [0], [0, 0, 1, 0], [], []>} : vector<2x8xf32>, vector<16x8xf32>, vector<2x16xf32> -> vector<2x16xf32>
    %263 = vector.extract_strided_slice %40 {offsets = [0, 0], sizes = [2, 16], strides = [1, 1]} : vector<16x16xf32> to vector<2x16xf32>
    %264 = arith.addf %262, %263 : vector<2x16xf32>
    %cst_146 = arith.constant dense<0xFF800000> : vector<2xf32>
    %265 = vector.multi_reduction <maximumf>, %264, %cst_146 [1] : vector<2x16xf32> to vector<2xf32>
    %266 = vector.shape_cast %265 : vector<2xf32> to vector<2x1xf32>
    %267 = vector.broadcast %266 : vector<2x1xf32> to vector<2x16xf32>
    %268 = arith.subf %264, %267 : vector<2x16xf32>
    %269 = math.exp %268 : vector<2x16xf32>
    %cst_147 = arith.constant dense<0.000000e+00> : vector<2xf32>
    %270 = vector.multi_reduction <add>, %269, %cst_147 [1] : vector<2x16xf32> to vector<2xf32>
    %271 = vector.shape_cast %270 : vector<2xf32> to vector<2x1xf32>
    %272 = tpu.reciprocal %271 {approx = true} : vector<2x1xf32> -> vector<2x1xf32>
    %273 = vector.broadcast %272 : vector<2x1xf32> to vector<2x16xf32>
    %274 = arith.mulf %269, %273 : vector<2x16xf32>
    %cst_148 = arith.constant dense<0.000000e+00> : vector<2x8xf32>
    %275 = tpu.matmul %274, %261, %cst_148 {dimension_numbers = #tpu.dot_dimension_numbers<[1], [0], [0], [1], [0, 0, 1, 1], [], []>} : vector<2x16xf32>, vector<16x8xf32>, vector<2x8xf32> -> vector<2x8xf32>
    %c0_149 = arith.constant 0 : index
    %c8_150 = arith.constant 8 : index
    %276 = vector.load %arg15[%c0_149, %c8_150] : memref<16x32xf32, #tpu.memory_space<vmem>>, vector<2x8xf32>
    tpu.vector_store %arg15[%c0_149, %c8_150], %275 {strides = array<i32>} : memref<16x32xf32, #tpu.memory_space<vmem>>, vector<2x8xf32>,
    %c0_151 = arith.constant 0 : index
    %c16_152 = arith.constant 16 : index
    %277 = vector.load %arg14[%c0_151, %c16_152] : memref<16x96xf32, #tpu.memory_space<vmem>>, vector<2x8xf32>
    %c0_153 = arith.constant 0 : index
    %c48_154 = arith.constant 48 : index
    %278 = vector.load %arg14[%c0_153, %c48_154] : memref<16x96xf32, #tpu.memory_space<vmem>>, vector<16x8xf32>
    %c0_155 = arith.constant 0 : index
    %c80_156 = arith.constant 80 : index
    %279 = vector.load %arg14[%c0_155, %c80_156] : memref<16x96xf32, #tpu.memory_space<vmem>>, vector<16x8xf32>
    %cst_157 = arith.constant dense<0.000000e+00> : vector<2x16xf32>
    %280 = tpu.matmul %277, %278, %cst_157 {dimension_numbers = #tpu.dot_dimension_numbers<[1], [1], [0], [0], [0, 0, 1, 0], [], []>} : vector<2x8xf32>, vector<16x8xf32>, vector<2x16xf32> -> vector<2x16xf32>
    %281 = vector.extract_strided_slice %40 {offsets = [0, 0], sizes = [2, 16], strides = [1, 1]} : vector<16x16xf32> to vector<2x16xf32>
    %282 = arith.addf %280, %281 : vector<2x16xf32>
    %cst_158 = arith.constant dense<0xFF800000> : vector<2xf32>
    %283 = vector.multi_reduction <maximumf>, %282, %cst_158 [1] : vector<2x16xf32> to vector<2xf32>
    %284 = vector.shape_cast %283 : vector<2xf32> to vector<2x1xf32>
    %285 = vector.broadcast %284 : vector<2x1xf32> to vector<2x16xf32>
    %286 = arith.subf %282, %285 : vector<2x16xf32>
    %287 = math.exp %286 : vector<2x16xf32>
    %cst_159 = arith.constant dense<0.000000e+00> : vector<2xf32>
    %288 = vector.multi_reduction <add>, %287, %cst_159 [1] : vector<2x16xf32> to vector<2xf32>
    %289 = vector.shape_cast %288 : vector<2xf32> to vector<2x1xf32>
    %290 = tpu.reciprocal %289 {approx = true} : vector<2x1xf32> -> vector<2x1xf32>
    %291 = vector.broadcast %290 : vector<2x1xf32> to vector<2x16xf32>
    %292 = arith.mulf %287, %291 : vector<2x16xf32>
    %cst_160 = arith.constant dense<0.000000e+00> : vector<2x8xf32>
    %293 = tpu.matmul %292, %279, %cst_160 {dimension_numbers = #tpu.dot_dimension_numbers<[1], [0], [0], [1], [0, 0, 1, 1], [], []>} : vector<2x16xf32>, vector<16x8xf32>, vector<2x8xf32> -> vector<2x8xf32>
    %c0_161 = arith.constant 0 : index
    %c16_162 = arith.constant 16 : index
    %294 = vector.load %arg15[%c0_161, %c16_162] : memref<16x32xf32, #tpu.memory_space<vmem>>, vector<2x8xf32>
    tpu.vector_store %arg15[%c0_161, %c16_162], %293 {strides = array<i32>} : memref<16x32xf32, #tpu.memory_space<vmem>>, vector<2x8xf32>,
    %c0_163 = arith.constant 0 : index
    %c24_164 = arith.constant 24 : index
    %295 = vector.load %arg14[%c0_163, %c24_164] : memref<16x96xf32, #tpu.memory_space<vmem>>, vector<2x8xf32>
    %c0_165 = arith.constant 0 : index
    %c56_166 = arith.constant 56 : index
    %296 = vector.load %arg14[%c0_165, %c56_166] : memref<16x96xf32, #tpu.memory_space<vmem>>, vector<16x8xf32>
    %c0_167 = arith.constant 0 : index
    %c88_168 = arith.constant 88 : index
    %297 = vector.load %arg14[%c0_167, %c88_168] : memref<16x96xf32, #tpu.memory_space<vmem>>, vector<16x8xf32>
    %cst_169 = arith.constant dense<0.000000e+00> : vector<2x16xf32>
    %298 = tpu.matmul %295, %296, %cst_169 {dimension_numbers = #tpu.dot_dimension_numbers<[1], [1], [0], [0], [0, 0, 1, 0], [], []>} : vector<2x8xf32>, vector<16x8xf32>, vector<2x16xf32> -> vector<2x16xf32>
    %299 = vector.extract_strided_slice %40 {offsets = [0, 0], sizes = [2, 16], strides = [1, 1]} : vector<16x16xf32> to vector<2x16xf32>
    %300 = arith.addf %298, %299 : vector<2x16xf32>
    %cst_170 = arith.constant dense<0xFF800000> : vector<2xf32>
    %301 = vector.multi_reduction <maximumf>, %300, %cst_170 [1] : vector<2x16xf32> to vector<2xf32>
    %302 = vector.shape_cast %301 : vector<2xf32> to vector<2x1xf32>
    %303 = vector.broadcast %302 : vector<2x1xf32> to vector<2x16xf32>
    %304 = arith.subf %300, %303 : vector<2x16xf32>
    %305 = math.exp %304 : vector<2x16xf32>
    %cst_171 = arith.constant dense<0.000000e+00> : vector<2xf32>
    %306 = vector.multi_reduction <add>, %305, %cst_171 [1] : vector<2x16xf32> to vector<2xf32>
    %307 = vector.shape_cast %306 : vector<2xf32> to vector<2x1xf32>
    %308 = tpu.reciprocal %307 {approx = true} : vector<2x1xf32> -> vector<2x1xf32>
    %309 = vector.broadcast %308 : vector<2x1xf32> to vector<2x16xf32>
    %310 = arith.mulf %305, %309 : vector<2x16xf32>
    %cst_172 = arith.constant dense<0.000000e+00> : vector<2x8xf32>
    %311 = tpu.matmul %310, %297, %cst_172 {dimension_numbers = #tpu.dot_dimension_numbers<[1], [0], [0], [1], [0, 0, 1, 1], [], []>} : vector<2x16xf32>, vector<16x8xf32>, vector<2x8xf32> -> vector<2x8xf32>
    %c0_173 = arith.constant 0 : index
    %c24_174 = arith.constant 24 : index
    %312 = vector.load %arg15[%c0_173, %c24_174] : memref<16x32xf32, #tpu.memory_space<vmem>>, vector<2x8xf32>
    tpu.vector_store %arg15[%c0_173, %c24_174], %311 {strides = array<i32>} : memref<16x32xf32, #tpu.memory_space<vmem>>, vector<2x8xf32>,
    %313 = vector.extract_strided_slice %204 {offsets = [0, 0], sizes = [2, 32], strides = [1, 1]} : vector<16x32xf32> to vector<2x32xf32>
    %c0_175 = arith.constant 0 : index
    %c0_176 = arith.constant 0 : index
    %314 = vector.load %arg15[%c0_175, %c0_176] : memref<16x32xf32, #tpu.memory_space<vmem>>, vector<2x32xf32>
    %c1_177 = arith.constant 1 : index
    %c0_178 = arith.constant 0 : index
    %c0_179 = arith.constant 0 : index
    %315 = vector.load %arg8[%c1_177, %c0_178, %c0_179] : memref<2x32x32xf32, #tpu.memory_space<vmem>>, vector<1x32x32xf32>
    %316 = vector.shape_cast %315 : vector<1x32x32xf32> to vector<32x32xf32>
    %cst_180 = arith.constant dense<0.000000e+00> : vector<2x32xf32>
    %317 = tpu.matmul %314, %316, %cst_180 {dimension_numbers = #tpu.dot_dimension_numbers<[1], [0], [0], [1], [0, 0, 1, 1], [], []>} : vector<2x32xf32>, vector<32x32xf32>, vector<2x32xf32> -> vector<2x32xf32>
    %318 = arith.addf %313, %317 : vector<2x32xf32>
    %c14 = arith.constant 14 : index
    %c0_181 = arith.constant 0 : index
    %c0_182 = arith.constant 0 : index
    %319 = vector.load %arg5[%c14, %c0_181, %c0_182] : memref<16x1x32xf32, #tpu.memory_space<vmem>>, vector<1x1x32xf32>
    %320 = vector.shape_cast %319 : vector<1x1x32xf32> to vector<1x32xf32>
    %321 = vector.broadcast %320 : vector<1x32xf32> to vector<2x32xf32>
    %322 = arith.addf %318, %321 : vector<2x32xf32>
    %c12 = arith.constant 12 : index
    %c0_183 = arith.constant 0 : index
    %c0_184 = arith.constant 0 : index
    %323 = vector.load %arg5[%c12, %c0_183, %c0_184] : memref<16x1x32xf32, #tpu.memory_space<vmem>>, vector<1x1x32xf32>
    %324 = vector.shape_cast %323 : vector<1x1x32xf32> to vector<1x32xf32>
    %c13 = arith.constant 13 : index
    %c0_185 = arith.constant 0 : index
    %c0_186 = arith.constant 0 : index
    %325 = vector.load %arg5[%c13, %c0_185, %c0_186] : memref<16x1x32xf32, #tpu.memory_space<vmem>>, vector<1x1x32xf32>
    %326 = vector.shape_cast %325 : vector<1x1x32xf32> to vector<1x32xf32>
    %cst_187 = arith.constant dense<0.000000e+00> : vector<2xf32>
    %327 = vector.multi_reduction <add>, %322, %cst_187 [1] : vector<2x32xf32> to vector<2xf32>
    %328 = vector.shape_cast %327 : vector<2xf32> to vector<2x1xf32>
    %cst_188 = arith.constant 3.200000e+01 : f32
    %329 = vector.broadcast %cst_188 : f32 to vector<2x1xf32>
    %330 = arith.divf %328, %329 : vector<2x1xf32>
    %331 = vector.broadcast %330 : vector<2x1xf32> to vector<2x32xf32>
    %332 = arith.subf %322, %331 : vector<2x32xf32>
    %333 = vector.broadcast %330 : vector<2x1xf32> to vector<2x32xf32>
    %334 = arith.subf %322, %333 : vector<2x32xf32>
    %335 = arith.mulf %332, %334 : vector<2x32xf32>
    %cst_189 = arith.constant dense<0.000000e+00> : vector<2xf32>
    %336 = vector.multi_reduction <add>, %335, %cst_189 [1] : vector<2x32xf32> to vector<2xf32>
    %337 = vector.shape_cast %336 : vector<2xf32> to vector<2x1xf32>
    %cst_190 = arith.constant 3.200000e+01 : f32
    %338 = vector.broadcast %cst_190 : f32 to vector<2x1xf32>
    %339 = arith.divf %337, %338 : vector<2x1xf32>
    %340 = vector.broadcast %330 : vector<2x1xf32> to vector<2x32xf32>
    %341 = arith.subf %322, %340 : vector<2x32xf32>
    %cst_191 = arith.constant 9.99999974E-6 : f32
    %342 = vector.broadcast %cst_191 : f32 to vector<2x1xf32>
    %343 = arith.addf %339, %342 : vector<2x1xf32>
    %344 = math.rsqrt %343 : vector<2x1xf32>
    %345 = vector.broadcast %344 : vector<2x1xf32> to vector<2x32xf32>
    %346 = arith.mulf %341, %345 : vector<2x32xf32>
    %347 = vector.broadcast %324 : vector<1x32xf32> to vector<2x32xf32>
    %348 = arith.mulf %346, %347 : vector<2x32xf32>
    %349 = vector.broadcast %326 : vector<1x32xf32> to vector<2x32xf32>
    %350 = arith.addf %348, %349 : vector<2x32xf32>
    %c1_192 = arith.constant 1 : index
    %c0_193 = arith.constant 0 : index
    %c0_194 = arith.constant 0 : index
    %351 = vector.load %arg9[%c1_192, %c0_193, %c0_194] : memref<2x32x64xf32, #tpu.memory_space<vmem>>, vector<1x32x64xf32>
    %352 = vector.shape_cast %351 : vector<1x32x64xf32> to vector<32x64xf32>
    %cst_195 = arith.constant dense<0.000000e+00> : vector<2x64xf32>
    %353 = tpu.matmul %350, %352, %cst_195 {dimension_numbers = #tpu.dot_dimension_numbers<[1], [0], [0], [1], [0, 0, 1, 1], [], []>} : vector<2x32xf32>, vector<32x64xf32>, vector<2x64xf32> -> vector<2x64xf32>
    %c1_196 = arith.constant 1 : index
    %c0_197 = arith.constant 0 : index
    %c0_198 = arith.constant 0 : index
    %354 = vector.load %arg10[%c1_196, %c0_197, %c0_198] : memref<2x1x64xf32, #tpu.memory_space<vmem>>, vector<1x1x64xf32>
    %355 = vector.shape_cast %354 : vector<1x1x64xf32> to vector<1x64xf32>
    %356 = vector.broadcast %355 : vector<1x64xf32> to vector<2x64xf32>
    %357 = arith.addf %353, %356 : vector<2x64xf32>
    %cst_199 = arith.constant 1.702000e+00 : f32
    %358 = vector.broadcast %cst_199 : f32 to vector<2x64xf32>
    %359 = arith.mulf %358, %357 : vector<2x64xf32>
    %360 = arith.negf %359 : vector<2x64xf32>
    %361 = math.exp %360 : vector<2x64xf32>
    %cst_200 = arith.constant 1.000000e+00 : f32
    %362 = vector.broadcast %cst_200 : f32 to vector<2x64xf32>
    %363 = arith.addf %362, %361 : vector<2x64xf32>
    %364 = arith.divf %362, %363 : vector<2x64xf32>
    %365 = arith.mulf %357, %364 : vector<2x64xf32>
    %c1_201 = arith.constant 1 : index
    %c0_202 = arith.constant 0 : index
    %c0_203 = arith.constant 0 : index
    %366 = vector.load %arg11[%c1_201, %c0_202, %c0_203] : memref<2x64x32xf32, #tpu.memory_space<vmem>>, vector<1x64x32xf32>
    %367 = vector.shape_cast %366 : vector<1x64x32xf32> to vector<64x32xf32>
    %cst_204 = arith.constant dense<0.000000e+00> : vector<2x32xf32>
    %368 = tpu.matmul %365, %367, %cst_204 {dimension_numbers = #tpu.dot_dimension_numbers<[1], [0], [0], [1], [0, 0, 1, 1], [], []>} : vector<2x64xf32>, vector<64x32xf32>, vector<2x32xf32> -> vector<2x32xf32>
    %369 = arith.addf %322, %368 : vector<2x32xf32>
    %c15 = arith.constant 15 : index
    %c0_205 = arith.constant 0 : index
    %c0_206 = arith.constant 0 : index
    %370 = vector.load %arg5[%c15, %c0_205, %c0_206] : memref<16x1x32xf32, #tpu.memory_space<vmem>>, vector<1x1x32xf32>
    %371 = vector.shape_cast %370 : vector<1x1x32xf32> to vector<1x32xf32>
    %372 = vector.broadcast %371 : vector<1x32xf32> to vector<2x32xf32>
    %373 = arith.addf %369, %372 : vector<2x32xf32>
    %c2 = arith.constant 2 : index
    %c0_207 = arith.constant 0 : index
    %c0_208 = arith.constant 0 : index
    %374 = vector.load %arg5[%c2, %c0_207, %c0_208] : memref<16x1x32xf32, #tpu.memory_space<vmem>>, vector<1x1x32xf32>
    %375 = vector.shape_cast %374 : vector<1x1x32xf32> to vector<1x32xf32>
    %c3 = arith.constant 3 : index
    %c0_209 = arith.constant 0 : index
    %c0_210 = arith.constant 0 : index
    %376 = vector.load %arg5[%c3, %c0_209, %c0_210] : memref<16x1x32xf32, #tpu.memory_space<vmem>>, vector<1x1x32xf32>
    %377 = vector.shape_cast %376 : vector<1x1x32xf32> to vector<1x32xf32>
    %cst_211 = arith.constant dense<0.000000e+00> : vector<2xf32>
    %378 = vector.multi_reduction <add>, %373, %cst_211 [1] : vector<2x32xf32> to vector<2xf32>
    %379 = vector.shape_cast %378 : vector<2xf32> to vector<2x1xf32>
    %cst_212 = arith.constant 3.200000e+01 : f32
    %380 = vector.broadcast %cst_212 : f32 to vector<2x1xf32>
    %381 = arith.divf %379, %380 : vector<2x1xf32>
    %382 = vector.broadcast %381 : vector<2x1xf32> to vector<2x32xf32>
    %383 = arith.subf %373, %382 : vector<2x32xf32>
    %384 = vector.broadcast %381 : vector<2x1xf32> to vector<2x32xf32>
    %385 = arith.subf %373, %384 : vector<2x32xf32>
    %386 = arith.mulf %383, %385 : vector<2x32xf32>
    %cst_213 = arith.constant dense<0.000000e+00> : vector<2xf32>
    %387 = vector.multi_reduction <add>, %386, %cst_213 [1] : vector<2x32xf32> to vector<2xf32>
    %388 = vector.shape_cast %387 : vector<2xf32> to vector<2x1xf32>
    %cst_214 = arith.constant 3.200000e+01 : f32
    %389 = vector.broadcast %cst_214 : f32 to vector<2x1xf32>
    %390 = arith.divf %388, %389 : vector<2x1xf32>
    %391 = vector.broadcast %381 : vector<2x1xf32> to vector<2x32xf32>
    %392 = arith.subf %373, %391 : vector<2x32xf32>
    %cst_215 = arith.constant 9.99999974E-6 : f32
    %393 = vector.broadcast %cst_215 : f32 to vector<2x1xf32>
    %394 = arith.addf %390, %393 : vector<2x1xf32>
    %395 = math.rsqrt %394 : vector<2x1xf32>
    %396 = vector.broadcast %395 : vector<2x1xf32> to vector<2x32xf32>
    %397 = arith.mulf %392, %396 : vector<2x32xf32>
    %398 = vector.broadcast %375 : vector<1x32xf32> to vector<2x32xf32>
    %399 = arith.mulf %397, %398 : vector<2x32xf32>
    %400 = vector.broadcast %377 : vector<1x32xf32> to vector<2x32xf32>
    %401 = arith.addf %399, %400 : vector<2x32xf32>
    %c0_216 = arith.constant 0 : index
    %c0_217 = arith.constant 0 : index
    %402 = vector.load %arg12[%c0_216, %c0_217] : memref<32x16xf32, #tpu.memory_space<vmem>>, vector<32x16xf32>
    %cst_218 = arith.constant dense<0.000000e+00> : vector<2x16xf32>
    %403 = tpu.matmul %401, %402, %cst_218 {dimension_numbers = #tpu.dot_dimension_numbers<[1], [0], [0], [1], [0, 0, 1, 1], [], []>} : vector<2x32xf32>, vector<32x16xf32>, vector<2x16xf32> -> vector<2x16xf32>
    %c0_219 = arith.constant 0 : index
    %c0_220 = arith.constant 0 : index
    %404 = vector.load %arg13[%c0_219, %c0_220] : memref<2x16xf32, #tpu.memory_space<vmem>>, vector<2x16xf32>
    tpu.vector_store %arg13[%c0_219, %c0_220], %403 {strides = array<i32>} : memref<2x16xf32, #tpu.memory_space<vmem>>, vector<2x16xf32>,
    return
  }
}

</mosaic_0001>

<bundles_post_ra>
// kernel: encode_image.1
= control target key start
LH: loop header
LB: loop body
LE: loop exit
PB: predicated region body
PF: predicated region fallthrough
CT: control target
= control target key end

     0   :  { %v3720_v3 = vmov 0.0|0.0   ;;  %vm75_vm0 = vcmask 523264   ;;  %s4412_s0 = inlined_call_operand.vmem [shape: f32[16,192], index: 0, kind: input, shape index: {}]   ;;  %s4413_s1 = inlined_call_operand.vmem [shape: f32[192,32], index: 1, kind: input, shape index: {}]   ;;  %s4414_s2 = inlined_call_operand.vmem [shape: f32[16,32], index: 2, kind: input, shape index: {}]   ;;  %s4415_s3 = inlined_call_operand.vmem [shape: f32[16,1], index: 3, kind: input, shape index: {}]   ;;  %s4416_s4 = inlined_call_operand.vmem [shape: f32[1,16], index: 4, kind: input, shape index: {}]   ;;  %s4417_s5 = inlined_call_operand.vmem [shape: f32[16,1,32], index: 5, kind: input, shape index: {}]   ;;  %s4418_s6 = inlined_call_operand.vmem [shape: f32[2,32,96], index: 6, kind: input, shape index: {}]   ;;  %s4419_s7 = inlined_call_operand.vmem [shape: f32[2,1,96], index: 7, kind: input, shape index: {}]   ;;  %s4420_s8 = inlined_call_operand.vmem [shape: f32[2,32,32], index: 8, kind: input, shape index: {}]   ;;  %s4421_s9 = inlined_call_operand.vmem [shape: f32[2,32,64], index: 9, kind: input, shape index: {}]   ;;  %s4422_s10 = inlined_call_operand.vmem [shape: f32[2,1,64], index: 10, kind: input, shape index: {}]   ;;  %s4423_s11 = inlined_call_operand.vmem [shape: f32[2,64,32], index: 11, kind: input, shape index: {}]   ;;  %s4424_s12 = inlined_call_operand.vmem [shape: f32[32,16], index: 12, kind: input, shape index: {}]   ;;  %s4425_s13 = inlined_call_operand.hbm [shape: f32[2,16], index: 13, kind: output, shape index: {}]  }
   0x1   :  { %v49_v0 = vld [vmem:[%s4413_s1] sm:$0xff]  ;;  %v50_v1 = vld [vmem:[%s4413_s1 + $0x8] sm:$0xff]  ;;  %v51_v2 = vld [vmem:[%s4413_s1 + $0x10] sm:$0xff]  ;;  %3332 = vmatprep.subr.bf16.mxu0 %v3720_v3 }
   0x2   :  { %v3333_v4 = vpack.c.bf16 %v50_v1, %v49_v0  ;;  %v52_v5 = vld [vmem:[%s4413_s1 + $0x18] sm:$0xff]  ;;  %v53_v7 = vld [vmem:[%s4413_s1 + $0x20] sm:$0xff]  ;;  %v54_v8 = vld [vmem:[%s4413_s1 + $0x28] sm:$0xff] }
   0x3   :  { %v3336_v6 = vpack.c.bf16 %v52_v5, %v51_v2  ;;  %v3339_v9 = vpack.c.bf16 %v54_v8, %v53_v7  ;;  %v55_v10 = vld [vmem:[%s4413_s1 + $0x30] sm:$0xff]  ;;  %v56_v11 = vld [vmem:[%s4413_s1 + $0x38] sm:$0xff]  ;;  %v46_v12 = vld [vmem:[%s4412_s0 + $0x8] sm:$0xff] }
   0x4   :  { %3334 = vmatpush1.bf16.msra.mxu0 %v3333_v4  ;;  %2874 = vmatprep.mubr.msk.f32.mxu0 %vm75_vm0, %v46_v12 }
   0x5   :  { %3335 = vmatprep.subr.bf16.mxu0 %v3720_v3 }
   0x8   :  { %3337 = vmatpush1.bf16.msra.mxu0 %v3336_v6 }
   0x9   :  { %3338 = vmatprep.subr.bf16.mxu0 %v3720_v3 }
   0xa   :  { %18 = vsyncpa [#allocation5], 0  ;;  %v3342_v13 = vpack.c.bf16 %v56_v11, %v55_v10  ;;  %v57_v14 = vld [vmem:[%s4413_s1 + $0x40] sm:$0xff]  ;;  %v58_v15 = vld [vmem:[%s4413_s1 + $0x48] sm:$0xff]  ;;  %vm160_vm1 = vcmask 261120   ;;  %vm365_vm2 = vcmask 785408  }
   0xb   :  { %v3345_v16 = vpack.c.bf16 %v58_v15, %v57_v14  ;;  %v59_v17 = vld [vmem:[%s4413_s1 + $0x50] sm:$0xff]  ;;  %v60_v18 = vld [vmem:[%s4413_s1 + $0x58] sm:$0xff]  ;;  %v61_v20 = vld [vmem:[%s4413_s1 + $0x60] sm:$0xff]  ;;  %vm376_vm3 = vcmask 64512   ;;  %vm460_vm7 = vcmask 130048   ;;  %s3725_s18 = smov 120  }
   0xc   :  { %3340 = vmatpush1.bf16.msra.mxu0 %v3339_v9  ;;  %v3348_v19 = vpack.c.bf16 %v60_v18, %v59_v17  ;;  %v62_v21 = vld [vmem:[%s4413_s1 + $0x68] sm:$0xff]  ;;  %v63_v23 = vld [vmem:[%s4413_s1 + $0x70] sm:$0xff]  ;;  %v64_v24 = vld [vmem:[%s4413_s1 + $0x78] sm:$0xff]  ;;  %s3726_s19 = smov 88   ;;  %s3727_s20 = smov 56   ;;  %vm784_vm8 = vcmask 130112  }
   0xd   :  { %3341 = vmatprep.subr.bf16.mxu0 %v3720_v3  ;;  %v3351_v22 = vpack.c.bf16 %v62_v21, %v61_v20  ;;  %v3354_v25 = vpack.c.bf16 %v64_v24, %v63_v23  ;;  %v65_v26 = vld [vmem:[%s4413_s1 + $0x80] sm:$0xff]  ;;  %v66_v27 = vld [vmem:[%s4413_s1 + $0x88] sm:$0xff]  ;;  %v67_v29 = vld [vmem:[%s4413_s1 + $0x90] sm:$0xff]  ;;  %s3728_s21 = smov 112   ;;  %s3729_s22 = smov 80   ;;  %vm999_vm9 = vcmask 195712  }
   0xe   :  { %v3357_v28 = vpack.c.bf16 %v66_v27, %v65_v26  ;;  %v68_v30 = vld [vmem:[%s4413_s1 + $0x98] sm:$0xff]  ;;  %v69_v32 = vld [vmem:[%s4413_s1 + $0xa0] sm:$0xff]  ;;  %v70_v33 = vld [vmem:[%s4413_s1 + $0xa8] sm:$0xff]  ;;  %s3730_s23 = smov 48   ;;  %s3731_s24 = smov 104   ;;  %vm1214_vm10 = vcmask 261312  }
   0xf   :  { %v3360_v31 = vpack.c.bf16 %v68_v30, %v67_v29  ;;  %v3363_v34 = vpack.c.bf16 %v70_v33, %v69_v32  ;;  %v71_v35 = vld [vmem:[%s4413_s1 + $0xb0] sm:$0xff]  ;;  %v72_v36 = vld [vmem:[%s4413_s1 + $0xb8] sm:$0xff]  ;;  %v45_v38 = vld [vmem:[%s4412_s0] sm:$0xff]  ;;  %s3732_s25 = smov 72   ;;  %s3733_s26 = smov 40   ;;  %vm3737_vm11 = vmmov 0  }
  0x10   :  { %3343 = vmatpush1.bf16.msra.mxu0 %v3342_v13  ;;  %v3366_v37 = vpack.c.bf16 %v72_v36, %v71_v35  ;;  %v48_v39 = vld [vmem:[%s4412_s0 + $0x18] sm:$0xff]  ;;  %v47_v40 = vld [vmem:[%s4412_s0 + $0x10] sm:$0xff]  ;;  %v73_v41 = vld [vmem:[%s4414_s2] sm:$0xff]  ;;  %s3721_s0 = smov 96   ;;  %s3734_s27 = smov 8   ;;  %vm1799_vm12 = vcmask 123904  }
  0x11   :  { %3344 = vmatprep.subr.bf16.mxu0 %v3720_v3  ;;  %v74_v45 = vld [vmem:[%s4414_s2 + $0x8] sm:$0xff]  ;;  %v2877_v5 = vld [vmem:[%s4417_s5] ss:$0 sm:$0xff]  ;;  %v2878_v7 = vld [vmem:[%s4417_s5 + $0x1] ss:$0 sm:$0xff]  ;;  %s3735_s28 = smov 16  }
  0x12   :  { %v273_v26 = vld [vmem:[%s4418_s6] sm:$0xff]  ;;  %v274_v27 = vld [vmem:[%s4418_s6 + $0x8] sm:$0xff]  ;;  %v276_v30 = vld [vmem:[%s4418_s6 + $0x18] sm:$0xff]  ;;  %s3736_s17 = smov 24   ;;  %vm1890_vm13 = vcmask 58368   ;;  %vm2074_vm14 = vcmask 123968  }
  0x13   :  { %v3368_v29 = vpack.c.bf16 %v274_v27, %v273_v26  ;;  %vm3981_vm4 = vmpackc.low %vm376_vm3, %vm376_vm3  ;;  %vm2258_vm15 = vcmask 189568  }
  0x14   :  { %3346 = vmatpush1.bf16.msra.mxu0 %v3345_v16 }
  0x15   :  { %3347 = vmatprep.subr.bf16.mxu0 %v3720_v3  ;;  %3369 = vmatprep.subr.bf16.mxu1 %v3368_v29 }
  0x16   :  { %3371 = vmatpush3.bf16.msra.mxu1 %v3368_v29 }
  0x18   :  { %3349 = vmatpush1.bf16.msra.mxu0 %v3348_v19 }
  0x19   :  { %3350 = vmatprep.subr.bf16.mxu0 %v3720_v3 }
  0x1c   :  { %3352 = vmatpush1.bf16.msra.mxu0 %v3351_v22 }
  0x1d   :  { %3353 = vmatprep.subr.bf16.mxu0 %v3720_v3 }
  0x20   :  { %3355 = vmatpush1.bf16.msra.mxu0 %v3354_v25 }
  0x21   :  { %3356 = vmatprep.subr.bf16.mxu0 %v3720_v3 }
  0x24   :  { %3358 = vmatpush1.bf16.msra.mxu0 %v3357_v28  ;;  %v275_v28 = vld [vmem:[%s4418_s6 + $0x10] sm:$0xff] }
  0x25   :  { %3359 = vmatprep.subr.bf16.mxu0 %v3720_v3 }
  0x28   :  { %3361 = vmatpush1.bf16.msra.mxu0 %v3360_v31  ;;  %v3372_v31 = vpack.c.bf16 %v276_v30, %v275_v28 }
  0x29   :  { %3362 = vmatprep.subr.bf16.mxu0 %v3720_v3 }
  0x2a   :  { %3373 = vmatprep.subr.bf16.mxu1 %v3372_v31 }
  0x2b   :  { %3375 = vmatpush3.bf16.msra.mxu1 %v3372_v31 }
  0x2c   :  { %3364 = vmatpush1.bf16.msra.mxu0 %v3363_v34 }
  0x2d   :  { %3365 = vmatprep.subr.bf16.mxu0 %v3720_v3 }
  0x30   :  { %3367 = vmatpush1.bf16.msra.mxu0 %v3366_v37 }
  0x33   :  { %147 = vmatmul.mubr.f32.vlgmr.msra.gmra.mrb[0].mxu0 %v45_v38 }
  0x34   :  { %2875 = vmatprep.mubr.msk.f32.mxu0 %vm75_vm0, %v48_v39  ;;  %v2882_v39 = vld [vmem:[%s4417_s5 + $0x4] ss:$0 sm:$0xff] }
  0x37   :  { %152 = vmatmul.mubr.f32.gmra.mrb[2].mxu0 %v47_v40 }
 0x106   :  { %v148_v42 = vpop.f32.mrb[0].mxu0 }
 0x107   :  { %v149_v43 = vadd.f32 %v148_v42, %v73_v41  ;;  %v150_v44 = vpop.f32.mrb[1].mxu0  ;;  %v2883_v41 = vld [vmem:[%s4417_s5 + $0x5] ss:$0 sm:$0xff] }
 0x109   :  { %v161_v46 = vsel %vm160_vm1, %v149_v43, 0.0 }
 0x10a   :  { %v153_v47 = vpop.f32.mrb[2].mxu0  ;;  %162 = vadd.xlane.f32.xlu0 %v161_v46 }
 0x10b   :  { %v154_v48 = vadd.f32 %v153_v47, %v74_v45  ;;  %v155_v49 = vpop.f32.mrb[3].mxu0 }
 0x10d   :  { %v164_v50 = vsel %vm160_vm1, %v154_v48, 0.0 }
 0x10e   :  { %165 = vadd.xlane.f32.xlu0 %v164_v50 }
 0x197   :  { %v163_v51 = vpop.xlane.xlu0 %162 }
 0x198   :  { %v168_v52 = vmul.f32 0.03125, %v163_v51 }
 0x19a   :  { %v170_v53 = vsub.f32 %v149_v43, %v168_v52 }
 0x19b   :  { %v166_v54 = vpop.xlane.xlu0 %165 }
 0x19c   :  { %v169_v55 = vmul.f32 0.03125, %v166_v54  ;;  %v172_v56 = vmul.f32 %v170_v53, %v170_v53 }
 0x19e   :  { %v171_v57 = vsub.f32 %v154_v48, %v169_v55  ;;  %v174_v58 = vsel %vm160_vm1, %v172_v56, 0.0  ;;  %v2884_v48 = vld [vmem:[%s4419_s7] ss:$0 sm:$0xff] }
 0x19f   :  { %175 = vadd.xlane.f32.xlu1 %v174_v58  ;;  %v204_v56 = vld [vmem:[%s4415_s3] sm:$0xff]  ;;  %v205_v58 = vld [vmem:[%s4415_s3 + $0x8] sm:$0xff] }
 0x1a0   :  { %v173_v59 = vmul.f32 %v171_v57, %v171_v57 }
 0x1a2   :  { %v177_v60 = vsel %vm160_vm1, %v173_v59, 0.0 }
 0x1a3   :  { %178 = vadd.xlane.f32.xlu1 %v177_v60 }
 0x22c   :  { %v176_v61 = vpop.xlane.xlu1 %175 }
 0x22d   :  { %v180_v62 = vmul.f32 0.03125, %v176_v61 }
 0x22f   :  { %v182_v63 = vadd.f32 1e-05, %v180_v62 }
 0x230   :  { %v179_v0 = vpop.xlane.xlu1 %178 }
 0x231   :  { %3616 = vrsqrt.f32 %v182_v63  ;;  %v181_v1 = vmul.f32 0.03125, %v179_v0 }
 0x233   :  { %v183_v2 = vadd.f32 1e-05, %v181_v1  ;;  %v2879_v1 = vld [vmem:[%s4416_s4] ss:$0 sm:$0xff]  ;;  %s3724_s4 = smov 64  }
 0x235   :  { %3618 = vrsqrt.f32 %v183_v2 }
 0x23b   :  { %v3617_v4 = vpop.eup %3616 }
 0x23c   :  { %v186_v6 = vmul.f32 %v3617_v4, %v170_v53  ;;  %v3723_v4 = vmov -1e+30  }
 0x23e   :  { %v194_v8 = vmul.f32 %v2877_v5, %v186_v6 }
 0x23f   :  { %v3619_v9 = vpop.eup %3618 }
 0x240   :  { %v3924_v10 = vadd.f32 %v2878_v7, %v194_v8  ;;  %v187_v11 = vmul.f32 %v3619_v9, %v171_v57  ;;  %v3722_v57 = vmov 0  }
 0x241   :  { %3539 = vset.pattern.permute.xlu1 %v3722_v57  ;;  %3615 = vset.pattern.permute.xlu0 %v3722_v57 }
 0x242   :  { %v231_v12 = vsel %vm160_vm1, %v3924_v10, 0.0  ;;  %v195_v13 = vmul.f32 %v2877_v5, %v187_v11 }
 0x243   :  { %232 = vadd.xlane.f32.xlu0 %v231_v12 }
 0x244   :  { %v3928_v14 = vadd.f32 %v2878_v7, %v195_v13 }
 0x246   :  { %v234_v15 = vsel %vm160_vm1, %v3928_v14, 0.0 }
 0x247   :  { %235 = vadd.xlane.f32.xlu1 %v234_v15 }
 0x2d0   :  { %v233_v16 = vpop.xlane.xlu0 %232 }
 0x2d1   :  { %v237_v17 = vmul.f32 0.03125, %v233_v16 }
 0x2d3   :  { %v239_v18 = vsub.f32 %v3924_v10, %v237_v17 }
 0x2d4   :  { %v236_v19 = vpop.xlane.xlu1 %235 }
 0x2d5   :  { %v238_v20 = vmul.f32 0.03125, %v236_v19  ;;  %v241_v21 = vmul.f32 %v239_v18, %v239_v18 }
 0x2d7   :  { %v240_v22 = vsub.f32 %v3928_v14, %v238_v20  ;;  %v243_v23 = vsel %vm160_vm1, %v241_v21, 0.0 }
 0x2d8   :  { %244 = vadd.xlane.f32.xlu0 %v243_v23 }
 0x2d9   :  { %v242_v24 = vmul.f32 %v240_v22, %v240_v22 }
 0x2db   :  { %v246_v25 = vsel %vm160_vm1, %v242_v24, 0.0 }
 0x2dc   :  { %247 = vadd.xlane.f32.xlu1 %v246_v25 }
 0x2ed   :  { %209 = vperm.xlu1 %3539, %v204_v56  }
 0x2f1   :  { %214 = vperm.xlu1 %3539, %v205_v58  }
 0x365   :  { %v245_v32 = vpop.xlane.xlu0 %244 }
 0x366   :  { %v249_v33 = vmul.f32 0.03125, %v245_v32 }
 0x368   :  { %v251_v34 = vadd.f32 1e-05, %v249_v33 }
 0x369   :  { %v248_v35 = vpop.xlane.xlu1 %247 }
 0x36a   :  { %3620 = vrsqrt.f32 %v251_v34  ;;  %v250_v36 = vmul.f32 0.03125, %v248_v35 }
 0x36c   :  { %v252_v37 = vadd.f32 1e-05, %v250_v36 }
 0x36d   :  { %v210_v0 = vpop.permute.xlu1 %209 }
 0x36e   :  { %3622 = vrsqrt.f32 %v252_v37  ;;  %vm223_vm6 = vcmp.eq.f32.partialorder %v210_v0, %v2879_v1 }
 0x36f   :  { %v3996_v7 = vsel %vm223_vm6, 0.0, %v3723_v4 }
 0x371   :  { %v215_v2 = vpop.permute.xlu1 %214 }
 0x372   :  { %vm224_vm5 = vcmp.eq.f32.partialorder %v215_v2, %v2879_v1 }
 0x373   :  { %v3994_v5 = vsel %vm224_vm5, 0.0, %v3723_v4 }
 0x374   :  { %v3621_v38 = vpop.eup %3620 }
 0x375   :  { %v255_v40 = vmul.f32 %v3621_v38, %v239_v18 }
 0x377   :  { %v263_v42 = vmul.f32 %v2882_v39, %v255_v40 }
 0x378   :  { %v3623_v43 = vpop.eup %3622 }
 0x379   :  { %v256_v44 = vmul.f32 %v3623_v43, %v240_v22  ;;  %v271_v45 = vadd.f32 %v2883_v41, %v263_v42 }
 0x37b   :  { %v264_v46 = vmul.f32 %v2882_v39, %v256_v44  ;;  %3113 = vmatprep.mubr.msk.f32.mxu1 %vm160_vm1, %v271_v45 }
 0x37d   :  { %v272_v47 = vadd.f32 %v2883_v41, %v264_v46 }
 0x37f   :  { %3114 = vmatmul.mubr.msk.f32.vlgmr.msra.gmra.mrb[0].mxu1 %vm160_vm1, %v272_v47 }
 0x452   :  { %v3115_v49 = vpop.f32.mrb[0].mxu1 }
 0x453   :  { %v362_v50 = vadd.f32 %v3115_v49, %v2884_v48  ;;  %v356_v51 = vpop.f32.mrb[1].mxu1 }
 0x454   :  { %v357_v52 = vadd.f32 %v2884_v48, %v356_v51 }
 0x455   :  { %367 = vst.msk [vmem:[#allocation2 + $0x8] sm:$0xff] %vm365_vm2, %v362_v50 }
 0x456   :  { %366 = vst.msk [vmem:[#allocation2] sm:$0xff] %vm365_vm2, %v357_v52 }
 0x45c   :  { %v3961_v53 = vld [vmem:[#allocation2 + $0x8] sm:$0xff] }
 0x45d   :  { %v3963_v54 = vld [vmem:[#allocation2] sm:$0xff] }
 0x45e   :  { %3120 = vmatprep.mubr.msk.f32.mxu1 %vm376_vm3, %v3963_v54  ;;  %v3969_v55 = vpack.i.bf16 %v3961_v53, %v3963_v54 }
 0x460   :  { %3535 = vrot.lane.b32.xlu0 %v3969_v55, %s3721_s0 }
 0x4d2   :  { %v3536_v59 = vpop.permute.xlu0 %3535 }
 0x4d3   :  { %v3538_v60 = vunpack.i.h.bf16 %v3536_v59  ;;  %v3537_v61 = vunpack.i.l.bf16 %v3536_v59 }
 0x4d5   :  { %v3376_v63 = vpack.c.bf16 %v3538_v60, %v3537_v61 }
 0x4d7   :  { %3378 = vmatprep.subr.msk.bf16.mxu1 %vm3981_vm4, %v3376_v63 }
 0x4d8   :  { %3381 = vmatpush3.bf16.xpose.msk.msra.mxu1 %vm3981_vm4, %v3376_v63 }
 0x4df   :  { %3121 = vmatmul.mubr.msk.f32.vlgmr.msra.gmra.mrb[2].mxu1 %vm376_vm3, %v3961_v53 }
 0x5b2   :  { %v3122_v6 = vpop.f32.mrb[2].mxu1 }
 0x5b3   :  { %v457_v8 = vadd.f32 %v3122_v6, %v3994_v5  ;;  %v451_v9 = vpop.f32.mrb[3].mxu1 }
 0x5b4   :  { %v452_v11 = vadd.f32 %v451_v9, %v3996_v7 }
 0x5b5   :  { %v464_v12 = vsel %vm460_vm7, %v457_v8, -inf }
 0x5b6   :  { %465 = vmax.xlane.f32.xlu0 %v464_v12  ;;  %v461_v13 = vsel %vm460_vm7, %v452_v11, -inf }
 0x5b7   :  { %462 = vmax.xlane.f32.xlu1 %v461_v13 }
 0x5c8   :  { %3541 = vrot.lane.b32.xlu1 %v3969_v55, %s3724_s4 }
 0x5cc   :  { %576 = vrot.lane.b32.xlu1 %v3963_v54, %s3725_s18 }
 0x5d0   :  { %578 = vrot.lane.b32.xlu1 %v3961_v53, %s3725_s18 }
 0x643   :  { %v466_v15 = vpop.xlane.xlu0 %465 }
 0x644   :  { %v468_v16 = vsub.f32 %v457_v8, %v466_v15  ;;  %v463_v17 = vpop.xlane.xlu1 %462 }
 0x645   :  { %v467_v18 = vsub.f32 %v452_v11, %v463_v17 }
 0x646   :  { %v471_v19 = vmul.f32 1.442695, %v468_v16 }
 0x647   :  { %v469_v20 = vmul.f32 1.442695, %v467_v18 }
 0x648   :  { %3624 = vpow2.f32 %v471_v19  ;;  %v3542_v21 = vpop.permute.xlu1 %3541 }
 0x649   :  { %v3544_v22 = vunpack.i.h.bf16 %v3542_v21  ;;  %v3543_v23 = vunpack.i.l.bf16 %v3542_v21  ;;  %3626 = vpow2.f32 %v469_v20 }
 0x64b   :  { %v3382_v24 = vpack.c.bf16 %v3544_v22, %v3543_v23 }
 0x64c   :  { %v577_v39 = vpop.permute.xlu1 %576 }
 0x64d   :  { %3383 = vmatprep.subr.bf16.mxu1 %v3382_v24 }
 0x64e   :  { %3385 = vmatpush3.bf16.msra.mxu1 %v3382_v24 }
 0x650   :  { %v579_v40 = vpop.permute.xlu1 %578 }
 0x652   :  { %v3625_v25 = vpop.eup %3624 }
 0x653   :  { %v476_v26 = vsel %vm460_vm7, %v3625_v25, 0.0  ;;  %v3627_v27 = vpop.eup %3626 }
 0x654   :  { %477 = vadd.xlane.f32.xlu0 %v476_v26  ;;  %v473_v28 = vsel %vm460_vm7, %v3627_v27, 0.0 }
 0x658   :  { %474 = vadd.xlane.f32.xlu0 %v473_v28 }
 0x66e   :  { %3546 = vrot.lane.b32.xlu0 %v3969_v55, %s3726_s19 }
 0x6e1   :  { %v478_v29 = vpop.xlane.xlu0 %477 }
 0x6e2   :  { %3628 = vrcp.f32 %v478_v29 }
 0x6e5   :  { %v475_v30 = vpop.xlane.xlu0 %474 }
 0x6e6   :  { %3630 = vrcp.f32 %v475_v30 }
 0x6e9   :  { %v3547_v31 = vpop.permute.xlu0 %3546 }
 0x6ea   :  { %v3549_v32 = vunpack.i.h.bf16 %v3547_v31  ;;  %v3548_v33 = vunpack.i.l.bf16 %v3547_v31 }
 0x6ec   :  { %v3386_v34 = vpack.c.bf16 %v3549_v32, %v3548_v33  ;;  %v3629_v35 = vpop.eup %3628 }
 0x6ed   :  { %v482_v38 = vmul.f32 %v3629_v35, %v3625_v25 }
 0x6ee   :  { %3388 = vmatprep.subr.msk.bf16.mxu1 %vm3981_vm4, %v3386_v34 }
 0x6f0   :  { %v3631_v36 = vpop.eup %3630 }
 0x6f1   :  { %v481_v37 = vmul.f32 %v3631_v36, %v3627_v27 }
 0x6f3   :  { %3127 = vmatprep.mubr.msk.f32.mxu1 %vm460_vm7, %v481_v37 }
 0x6f4   :  { %3128 = vmatmul.mubr.msk.f32.vlgmr.msra.gmra.mrb[4].mxu1 %vm460_vm7, %v482_v38 }
 0x6f5   :  { %3391 = vmatpush3.bf16.xpose.msk.msra.mxu1 %vm3981_vm4, %v3386_v34  ;;  %3134 = vmatprep.mubr.msk.f32.mxu1 %vm376_vm3, %v577_v39 }
 0x6fc   :  { %3135 = vmatmul.mubr.msk.f32.vlgmr.msra.gmra.mrb[6].mxu1 %vm376_vm3, %v579_v40 }
 0x7c7   :  { %v3129_v41 = vpop.f32.mrb[4].mxu1 }
 0x7c8   :  { %571 = vst.msk [vmem:[#allocation3 + $0x8] sm:$0xff] %vm376_vm3, %v3129_v41  ;;  %v561_v42 = vpop.f32.mrb[5].mxu1 }
 0x7c9   :  { %570 = vst.msk [vmem:[#allocation3] sm:$0xff] %vm376_vm3, %v561_v42 }
 0x7cf   :  { %v3136_v43 = vpop.f32.mrb[6].mxu1 }
 0x7d0   :  { %v664_v44 = vadd.f32 %v3136_v43, %v3994_v5  ;;  %v658_v45 = vpop.f32.mrb[7].mxu1 }
 0x7d1   :  { %v659_v46 = vadd.f32 %v658_v45, %v3996_v7 }
 0x7d2   :  { %v670_v47 = vsel %vm460_vm7, %v664_v44, -inf }
 0x7d3   :  { %671 = vmax.xlane.f32.xlu0 %v670_v47  ;;  %v667_v48 = vsel %vm460_vm7, %v659_v46, -inf }
 0x7d4   :  { %668 = vmax.xlane.f32.xlu1 %v667_v48 }
 0x7e5   :  { %3551 = vrot.lane.b32.xlu1 %v3969_v55, %s3727_s20 }
 0x7e9   :  { %791 = vrot.lane.b32.xlu1 %v3963_v54, %s3728_s21 }
 0x7ed   :  { %793 = vrot.lane.b32.xlu1 %v3961_v53, %s3728_s21 }
 0x860   :  { %v672_v49 = vpop.xlane.xlu0 %671 }
 0x861   :  { %v674_v50 = vsub.f32 %v664_v44, %v672_v49  ;;  %v669_v51 = vpop.xlane.xlu1 %668 }
 0x862   :  { %v673_v52 = vsub.f32 %v659_v46, %v669_v51 }
 0x863   :  { %v677_v56 = vmul.f32 1.442695, %v674_v50 }
 0x864   :  { %v675_v57 = vmul.f32 1.442695, %v673_v52 }
 0x865   :  { %3632 = vpow2.f32 %v677_v56  ;;  %v3552_v58 = vpop.permute.xlu1 %3551 }
 0x866   :  { %v3554_v59 = vunpack.i.h.bf16 %v3552_v58  ;;  %v3553_v60 = vunpack.i.l.bf16 %v3552_v58  ;;  %3634 = vpow2.f32 %v675_v57 }
 0x868   :  { %v3392_v61 = vpack.c.bf16 %v3554_v59, %v3553_v60 }
 0x869   :  { %v792_v18 = vpop.permute.xlu1 %791 }
 0x86a   :  { %3393 = vmatprep.subr.bf16.mxu1 %v3392_v61 }
 0x86b   :  { %3395 = vmatpush3.bf16.msra.mxu1 %v3392_v61 }
 0x86d   :  { %v794_v19 = vpop.permute.xlu1 %793 }
 0x86f   :  { %v3633_v63 = vpop.eup %3632 }
 0x870   :  { %v682_v0 = vsel %vm460_vm7, %v3633_v63, 0.0  ;;  %v3635_v1 = vpop.eup %3634 }
 0x871   :  { %683 = vadd.xlane.f32.xlu0 %v682_v0  ;;  %v679_v2 = vsel %vm460_vm7, %v3635_v1, 0.0 }
 0x875   :  { %680 = vadd.xlane.f32.xlu0 %v679_v2 }
 0x88b   :  { %3556 = vrot.lane.b32.xlu0 %v3969_v55, %s3729_s22 }
 0x8fe   :  { %v684_v4 = vpop.xlane.xlu0 %683 }
 0x8ff   :  { %3636 = vrcp.f32 %v684_v4 }
 0x902   :  { %v681_v6 = vpop.xlane.xlu0 %680 }
 0x903   :  { %3638 = vrcp.f32 %v681_v6 }
 0x906   :  { %v3557_v8 = vpop.permute.xlu0 %3556 }
 0x907   :  { %v3559_v9 = vunpack.i.h.bf16 %v3557_v8  ;;  %v3558_v11 = vunpack.i.l.bf16 %v3557_v8 }
 0x909   :  { %v3396_v12 = vpack.c.bf16 %v3559_v9, %v3558_v11  ;;  %v3637_v13 = vpop.eup %3636 }
 0x90a   :  { %v688_v17 = vmul.f32 %v3637_v13, %v3633_v63 }
 0x90b   :  { %3398 = vmatprep.subr.msk.bf16.mxu1 %vm3981_vm4, %v3396_v12 }
 0x90d   :  { %v3639_v15 = vpop.eup %3638 }
 0x90e   :  { %v687_v16 = vmul.f32 %v3639_v15, %v3635_v1 }
 0x910   :  { %3141 = vmatprep.mubr.msk.f32.mxu1 %vm460_vm7, %v687_v16 }
 0x911   :  { %3142 = vmatmul.mubr.msk.f32.vlgmr.msra.gmra.mrb[8].mxu1 %vm460_vm7, %v688_v17 }
 0x912   :  { %3401 = vmatpush3.bf16.xpose.msk.msra.mxu1 %vm3981_vm4, %v3396_v12  ;;  %3148 = vmatprep.mubr.msk.f32.mxu1 %vm376_vm3, %v792_v18 }
 0x919   :  { %3149 = vmatmul.mubr.msk.f32.vlgmr.msra.gmra.mrb[10].mxu1 %vm376_vm3, %v794_v19 }
 0x9e4   :  { %v4044_v20 = vpop.f32.mrb[8].mxu1 }
 0x9e5   :  { %v4046_v21 = vpop.f32.mrb[9].mxu1 }
 0x9ec   :  { %v3150_v22 = vpop.f32.mrb[10].mxu1 }
 0x9ed   :  { %v879_v23 = vadd.f32 %v3150_v22, %v3994_v5  ;;  %v873_v24 = vpop.f32.mrb[11].mxu1 }
 0x9ee   :  { %v874_v25 = vadd.f32 %v873_v24, %v3996_v7 }
 0x9ef   :  { %v885_v26 = vsel %vm460_vm7, %v879_v23, -inf }
 0x9f0   :  { %886 = vmax.xlane.f32.xlu0 %v885_v26  ;;  %v882_v27 = vsel %vm460_vm7, %v874_v25, -inf }
 0x9f1   :  { %883 = vmax.xlane.f32.xlu1 %v882_v27 }
 0xa02   :  { %3561 = vrot.lane.b32.xlu1 %v3969_v55, %s3730_s23 }
 0xa06   :  { %1006 = vrot.lane.b32.xlu1 %v3963_v54, %s3731_s24 }
 0xa0a   :  { %1008 = vrot.lane.b32.xlu1 %v3961_v53, %s3731_s24 }
 0xa7d   :  { %v887_v28 = vpop.xlane.xlu0 %886 }
 0xa7e   :  { %v889_v29 = vsub.f32 %v879_v23, %v887_v28  ;;  %v884_v30 = vpop.xlane.xlu1 %883  ;;  %v1220_v28 = vld [vmem:[%s4420_s8 + $0x8] sm:$0xff] }
 0xa7f   :  { %v888_v31 = vsub.f32 %v874_v25, %v884_v30  ;;  %v1221_v30 = vld [vmem:[%s4420_s8 + $0x10] sm:$0xff] }
 0xa80   :  { %v892_v32 = vmul.f32 1.442695, %v889_v29 }
 0xa81   :  { %v890_v33 = vmul.f32 1.442695, %v888_v31  ;;  %v1222_v31 = vld [vmem:[%s4420_s8 + $0x18] sm:$0xff] }
 0xa82   :  { %3640 = vpow2.f32 %v892_v32  ;;  %v3562_v34 = vpop.permute.xlu1 %3561  ;;  %v3420_v32 = vpack.c.bf16 %v1222_v31, %v1221_v30  ;;  %v2919_v31 = vld [vmem:[%s4422_s10] ss:$0 sm:$0xff] }
 0xa83   :  { %v3564_v35 = vunpack.i.h.bf16 %v3562_v34  ;;  %v3563_v36 = vunpack.i.l.bf16 %v3562_v34  ;;  %3642 = vpow2.f32 %v890_v33 }
 0xa85   :  { %v3402_v37 = vpack.c.bf16 %v3564_v35, %v3563_v36 }
 0xa86   :  { %v1007_v50 = vpop.permute.xlu1 %1006 }
 0xa87   :  { %3403 = vmatprep.subr.bf16.mxu1 %v3402_v37 }
 0xa88   :  { %3405 = vmatpush3.bf16.msra.mxu1 %v3402_v37 }
 0xa8a   :  { %v1009_v51 = vpop.permute.xlu1 %1008 }
 0xa8c   :  { %v3641_v38 = vpop.eup %3640 }
 0xa8d   :  { %v897_v54 = vsel %vm460_vm7, %v3641_v38, 0.0  ;;  %v3643_v39 = vpop.eup %3642 }
 0xa8e   :  { %898 = vadd.xlane.f32.xlu0 %v897_v54  ;;  %v894_v53 = vsel %vm460_vm7, %v3643_v39, 0.0 }
 0xa92   :  { %895 = vadd.xlane.f32.xlu0 %v894_v53 }
 0xaa8   :  { %3566 = vrot.lane.b32.xlu0 %v3969_v55, %s3732_s25 }
 0xb1b   :  { %v899_v40 = vpop.xlane.xlu0 %898 }
 0xb1c   :  { %3644 = vrcp.f32 %v899_v40 }
 0xb1f   :  { %v896_v41 = vpop.xlane.xlu0 %895 }
 0xb20   :  { %3646 = vrcp.f32 %v896_v41 }
 0xb23   :  { %v3567_v42 = vpop.permute.xlu0 %3566 }
 0xb24   :  { %v3569_v43 = vunpack.i.h.bf16 %v3567_v42  ;;  %v3568_v44 = vunpack.i.l.bf16 %v3567_v42 }
 0xb26   :  { %v3406_v45 = vpack.c.bf16 %v3569_v43, %v3568_v44  ;;  %v3645_v46 = vpop.eup %3644 }
 0xb27   :  { %v903_v49 = vmul.f32 %v3645_v46, %v3641_v38 }
 0xb28   :  { %3408 = vmatprep.subr.msk.bf16.mxu1 %vm3981_vm4, %v3406_v45 }
 0xb2a   :  { %v3647_v47 = vpop.eup %3646 }
 0xb2b   :  { %v902_v48 = vmul.f32 %v3647_v47, %v3643_v39  ;;  %v2914_v39 = vld [vmem:[%s4417_s5 + $0x8] ss:$0 sm:$0xff] }
 0xb2d   :  { %3155 = vmatprep.mubr.msk.f32.mxu1 %vm460_vm7, %v902_v48 }
 0xb2e   :  { %3156 = vmatmul.mubr.msk.f32.vlgmr.msra.gmra.mrb[12].mxu1 %vm460_vm7, %v903_v49 }
 0xb2f   :  { %3411 = vmatpush3.bf16.xpose.msk.msra.mxu1 %vm3981_vm4, %v3406_v45  ;;  %3162 = vmatprep.mubr.msk.f32.mxu1 %vm376_vm3, %v1007_v50 }
 0xb36   :  { %3163 = vmatmul.mubr.msk.f32.vlgmr.msra.gmra.mrb[14].mxu1 %vm376_vm3, %v1009_v51 }
 0xc01   :  { %v3157_v52 = vpop.f32.mrb[12].mxu1 }
 0xc02   :  { %v982_v56 = vpop.f32.mrb[13].mxu1 }
 0xc09   :  { %v3164_v57 = vpop.f32.mrb[14].mxu1 }
 0xc0a   :  { %v1094_v58 = vadd.f32 %v3164_v57, %v3994_v5  ;;  %v1088_v59 = vpop.f32.mrb[15].mxu1  ;;  %v1362_v57 = vld [vmem:[%s4421_s9] sm:$0xff] }
 0xc0b   :  { %v1089_v60 = vadd.f32 %v1088_v59, %v3996_v7 }
 0xc0c   :  { %v1100_v61 = vsel %vm460_vm7, %v1094_v58, -inf }
 0xc0d   :  { %1101 = vmax.xlane.f32.xlu0 %v1100_v61  ;;  %v1097_v63 = vsel %vm460_vm7, %v1089_v60, -inf  ;;  %v1365_v61 = vld [vmem:[%s4421_s9 + $0x18] sm:$0xff] }
 0xc0e   :  { %1098 = vmax.xlane.f32.xlu1 %v1097_v63 }
 0xc1f   :  { %3571 = vrot.lane.b32.xlu1 %v3969_v55, %s3733_s26 }
 0xc23   :  { %780 = vrot.lane.b32.xlu1 %v4044_v20, %s3734_s27 }
 0xc27   :  { %993 = vrot.lane.b32.xlu1 %v982_v56, %s3735_s28 }
 0xc2b   :  { %995 = vrot.lane.b32.xlu1 %v3157_v52, %s3735_s28 }
 0xc9a   :  { %v1102_v5 = vpop.xlane.xlu0 %1101 }
 0xc9b   :  { %v1104_v0 = vsub.f32 %v1094_v58, %v1102_v5  ;;  %v1099_v1 = vpop.xlane.xlu1 %1098  ;;  %v1363_v58 = vld [vmem:[%s4421_s9 + $0x8] sm:$0xff] }
 0xc9c   :  { %v1103_v2 = vsub.f32 %v1089_v60, %v1099_v1  ;;  %v3424_v59 = vpack.c.bf16 %v1363_v58, %v1362_v57  ;;  %v1364_v60 = vld [vmem:[%s4421_s9 + $0x10] sm:$0xff] }
 0xc9d   :  { %v1107_v4 = vmul.f32 1.442695, %v1104_v0  ;;  %v3428_v63 = vpack.c.bf16 %v1365_v61, %v1364_v60 }
 0xc9e   :  { %v1105_v6 = vmul.f32 1.442695, %v1103_v2 }
 0xc9f   :  { %v3572_v8 = vpop.permute.xlu1 %3571 }
 0xca0   :  { %3648 = vpow2.f32 %v1105_v6  ;;  %v3574_v9 = vunpack.i.h.bf16 %v3572_v8  ;;  %v3573_v11 = vunpack.i.l.bf16 %v3572_v8 }
 0xca1   :  { %3650 = vpow2.f32 %v1107_v4 }
 0xca2   :  { %v3412_v55 = vpack.c.bf16 %v3574_v9, %v3573_v11  ;;  %v2917_v9 = vld [vmem:[%s4417_s5 + $0x6] ss:$0 sm:$0xff] }
 0xca3   :  { %v781_v12 = vpop.permute.xlu1 %780 }
 0xca4   :  { %786 = vst.msk [vmem:[#allocation3 + $0x8] sm:$0xff] %vm784_vm8, %v781_v12  ;;  %3413 = vmatprep.subr.bf16.mxu0 %v3412_v55 }
 0xca5   :  { %3415 = vmatpush3.bf16.msra.mxu0 %v3412_v55  ;;  %v2918_v55 = vld [vmem:[%s4417_s5 + $0x7] ss:$0 sm:$0xff] }
 0xca6   :  { %3425 = vmatprep.subr.bf16.mxu0 %v3424_v59 }
 0xca7   :  { %v994_v13 = vpop.permute.xlu1 %993 }
 0xcaa   :  { %v3649_v15 = vpop.eup %3648 }
 0xcab   :  { %v996_v16 = vpop.permute.xlu1 %995  ;;  %v1109_v17 = vsel %vm460_vm7, %v3649_v15, 0.0  ;;  %v3651_v18 = vpop.eup %3650 }
 0xcac   :  { %1001 = vst.msk [vmem:[#allocation3 + $0x8] sm:$0xff] %vm999_vm9, %v996_v16  ;;  %1110 = vadd.xlane.f32.xlu0 %v1109_v17  ;;  %v1112_v19 = vsel %vm460_vm7, %v3651_v18, 0.0 }
 0xcb0   :  { %1113 = vadd.xlane.f32.xlu0 %v1112_v19  ;;  %v1470_v19 = vld [vmem:[%s4423_s11] sm:$0xff] }
 0xcc6   :  { %778 = vrot.lane.b32.xlu0 %v4046_v21, %s3734_s27  ;;  %v1219_v21 = vld [vmem:[%s4420_s8] sm:$0xff] }
 0xcc7   :  { %v3416_v29 = vpack.c.bf16 %v1220_v28, %v1219_v21  ;;  %v1476_v28 = vld [vmem:[%s4423_s11 + $0x30] sm:$0xff] }
 0xcc9   :  { %3417 = vmatprep.subr.bf16.mxu1 %v3416_v29 }
 0xcca   :  { %3419 = vmatpush3.bf16.msra.mxu1 %v3416_v29  ;;  %v1477_v29 = vld [vmem:[%s4423_s11 + $0x38] sm:$0xff] }
 0xccb   :  { %3421 = vmatprep.subr.bf16.mxu1 %v3420_v32  ;;  %v3444_v30 = vpack.c.bf16 %v1477_v29, %v1476_v28  ;;  %v2937_v28 = vld [vmem:[%s4419_s7 + $0x1] ss:$0 sm:$0xff] }
 0xcce   :  { %3423 = vmatpush3.bf16.msra.mxu1 %v3420_v32 }
 0xd39   :  { %v1111_v20 = vpop.xlane.xlu0 %1110 }
 0xd3a   :  { %3652 = vrcp.f32 %v1111_v20  ;;  %v1471_v20 = vld [vmem:[%s4423_s11 + $0x8] sm:$0xff] }
 0xd3d   :  { %v1114_v22 = vpop.xlane.xlu0 %1113 }
 0xd3e   :  { %3654 = vrcp.f32 %v1114_v22  ;;  %v3432_v22 = vpack.c.bf16 %v1471_v20, %v1470_v19  ;;  %v2930_v19 = vld [vmem:[%s4417_s5 + $0xa] ss:$0 sm:$0xff] }
 0xd40   :  { %3433 = vmatprep.subr.bf16.mxu1 %v3432_v22 }
 0xd41   :  { %v779_v23 = vpop.permute.xlu0 %778 }
 0xd42   :  { %785 = vst.msk [vmem:[#allocation3] sm:$0xff] %vm784_vm8, %v779_v23  ;;  %v1472_v23 = vld [vmem:[%s4423_s11 + $0x10] sm:$0xff] }
 0xd43   :  { %1000 = vst.msk [vmem:[#allocation3] sm:$0xff] %vm999_vm9, %v994_v13 }
 0xd44   :  { %v3653_v24 = vpop.eup %3652 }
 0xd45   :  { %v1117_v25 = vmul.f32 %v3653_v24, %v3649_v15  ;;  %v1473_v24 = vld [vmem:[%s4423_s11 + $0x18] sm:$0xff] }
 0xd47   :  { %3169 = vmatprep.mubr.msk.f32.mxu0 %vm460_vm7, %v1117_v25  ;;  %v3436_v25 = vpack.c.bf16 %v1473_v24, %v1472_v23  ;;  %v2931_v24 = vld [vmem:[%s4417_s5 + $0xb] ss:$0 sm:$0xff] }
 0xd48   :  { %v3655_v26 = vpop.eup %3654 }
 0xd49   :  { %v1118_v27 = vmul.f32 %v3655_v26, %v3651_v18  ;;  %v1474_v26 = vld [vmem:[%s4423_s11 + $0x20] sm:$0xff] }
 0xd4b   :  { %3170 = vmatmul.mubr.msk.f32.vlgmr.msra.gmra.mrb[4].mxu0 %vm460_vm7, %v1118_v27  ;;  %v1475_v27 = vld [vmem:[%s4423_s11 + $0x28] sm:$0xff] }
 0xd4c   :  { %3427 = vmatpush3.bf16.msra.mxu0 %v3424_v59  ;;  %v3440_v21 = vpack.c.bf16 %v1475_v27, %v1474_v26 }
 0xd4d   :  { %3429 = vmatprep.subr.bf16.mxu0 %v3428_v63 }
 0xd50   :  { %3431 = vmatpush3.bf16.msra.mxu0 %v3428_v63 }
 0xe1e   :  { %v3171_v33 = vpop.f32.mrb[4].mxu0 }
 0xe1f   :  { %1210 = vrot.lane.b32.xlu1 %v3171_v33, %s3736_s17  ;;  %v1197_v34 = vpop.f32.mrb[5].mxu0 }
 0xe20   :  { %1208 = vrot.lane.b32.xlu0 %v1197_v34, %s3736_s17 }
 0xe91   :  { %v1211_v35 = vpop.permute.xlu1 %1210 }
 0xe92   :  { %1216 = vst.msk [vmem:[#allocation3 + $0x8] sm:$0xff] %vm1214_vm10, %v1211_v35  ;;  %v1209_v36 = vpop.permute.xlu0 %1208 }
 0xe93   :  { %1215 = vst.msk [vmem:[#allocation3] sm:$0xff] %vm1214_vm10, %v1209_v36 }
 0xe99   :  { %v1218_v38 = vld [vmem:[#allocation3 + $0x8] sm:$0xff] }
 0xe9a   :  { %v1217_v37 = vld [vmem:[#allocation3] sm:$0xff] }
 0xe9b   :  { %3180 = vmatprep.mubr.msk.f32.mxu1 %vm160_vm1, %v1217_v37 }
 0xe9c   :  { %3181 = vmatmul.mubr.msk.f32.vlgmr.msra.gmra.mrb[16].mxu1 %vm160_vm1, %v1218_v38 }
 0xe9d   :  { %3435 = vmatpush3.bf16.msra.mxu1 %v3432_v22 }
 0xe9e   :  { %3437 = vmatprep.subr.bf16.mxu1 %v3436_v25 }
 0xea1   :  { %3439 = vmatpush3.bf16.msra.mxu1 %v3436_v25 }
 0xea2   :  { %3441 = vmatprep.subr.bf16.mxu1 %v3440_v21 }
 0xea5   :  { %3443 = vmatpush3.bf16.msra.mxu1 %v3440_v21 }
 0xea6   :  { %3445 = vmatprep.subr.bf16.mxu1 %v3444_v30 }
 0xea9   :  { %3447 = vmatpush3.bf16.msra.mxu1 %v3444_v30 }
 0xeaa   :  { %3460 = vmatprep.subr.bf16.mxu1 %v3720_v3 }
 0xf6f   :  { %v3182_v54 = vpop.f32.mrb[16].mxu1 }
 0xf70   :  { %v1305_v53 = vadd.f32 %v3182_v54, %v3928_v14  ;;  %v1295_v40 = vpop.f32.mrb[17].mxu1 }
 0xf71   :  { %v1304_v41 = vadd.f32 %v1295_v40, %v3924_v10 }
 0xf72   :  { %v4111_v42 = vadd.f32 %v2914_v39, %v1305_v53 }
 0xf73   :  { %v4113_v43 = vadd.f32 %v2914_v39, %v1304_v41 }
 0xf74   :  { %v1323_v44 = vsel %vm160_vm1, %v4111_v42, 0.0 }
 0xf75   :  { %1324 = vadd.xlane.f32.xlu1 %v1323_v44  ;;  %v1320_v45 = vsel %vm160_vm1, %v4113_v43, 0.0 }
 0xf76   :  { %1321 = vadd.xlane.f32.xlu0 %v1320_v45 }
0x1002   :  { %v1325_v46 = vpop.xlane.xlu1 %1324 }
0x1003   :  { %v1327_v47 = vmul.f32 0.03125, %v1325_v46  ;;  %v1322_v48 = vpop.xlane.xlu0 %1321 }
0x1004   :  { %v1326_v49 = vmul.f32 0.03125, %v1322_v48 }
0x1005   :  { %v1329_v14 = vsub.f32 %v4111_v42, %v1327_v47 }
0x1006   :  { %v1328_v10 = vsub.f32 %v4113_v43, %v1326_v49  ;;  %v2927_v49 = vld [vmem:[%s4417_s5 + $0x9] ss:$0 sm:$0xff] }
0x1007   :  { %v1331_v52 = vmul.f32 %v1329_v14, %v1329_v14 }
0x1008   :  { %v1330_v50 = vmul.f32 %v1328_v10, %v1328_v10 }
0x1009   :  { %v1335_v56 = vsel %vm160_vm1, %v1331_v52, 0.0 }
0x100a   :  { %v1332_v51 = vsel %vm160_vm1, %v1330_v50, 0.0 }
0x100b   :  { %1333 = vadd.xlane.f32.xlu0 %v1332_v51 }
0x100f   :  { %1336 = vadd.xlane.f32.xlu0 %v1335_v56 }
0x1098   :  { %v1334_v5 = vpop.xlane.xlu0 %1333 }
0x1099   :  { %v1338_v0 = vmul.f32 0.03125, %v1334_v5 }
0x109b   :  { %v1340_v1 = vadd.f32 1e-05, %v1338_v0 }
0x109c   :  { %v1337_v2 = vpop.xlane.xlu0 %1336 }
0x109d   :  { %3656 = vrsqrt.f32 %v1340_v1  ;;  %v1339_v4 = vmul.f32 0.03125, %v1337_v2  ;;  %v2932_v2 = vld [vmem:[%s4418_s6 + $0x20] sm:$0xff] }
0x109f   :  { %v1341_v6 = vadd.f32 1e-05, %v1339_v4  ;;  %v2933_v4 = vld [vmem:[%s4418_s6 + $0x28] sm:$0xff] }
0x10a1   :  { %3658 = vrsqrt.f32 %v1341_v6  ;;  %v3448_v6 = vpack.c.bf16 %v2933_v4, %v2932_v2 }
0x10a3   :  { %3449 = vmatprep.subr.bf16.mxu0 %v3448_v6 }
0x10a7   :  { %v3657_v8 = vpop.eup %3656 }
0x10a8   :  { %v1344_v11 = vmul.f32 %v3657_v8, %v1328_v10  ;;  %v2934_v8 = vld [vmem:[%s4418_s6 + $0x30] sm:$0xff] }
0x10aa   :  { %v1352_v12 = vmul.f32 %v2917_v9, %v1344_v11 }
0x10ab   :  { %v3659_v13 = vpop.eup %3658 }
0x10ac   :  { %v1345_v15 = vmul.f32 %v3659_v13, %v1329_v14  ;;  %v1360_v16 = vadd.f32 %v2918_v55, %v1352_v12 }
0x10ae   :  { %v1353_v17 = vmul.f32 %v2917_v9, %v1345_v15  ;;  %3191 = vmatprep.mubr.msk.f32.mxu0 %vm160_vm1, %v1360_v16  ;;  %v2935_v9 = vld [vmem:[%s4418_s6 + $0x38] sm:$0xff] }
0x10af   :  { %v3452_v11 = vpack.c.bf16 %v2935_v9, %v2934_v8 }
0x10b0   :  { %v1361_v18 = vadd.f32 %v2918_v55, %v1353_v17 }
0x10b2   :  { %3192 = vmatmul.mubr.msk.f32.vlgmr.msra.gmra.mrb[6].mxu0 %vm160_vm1, %v1361_v18 }
0x10b3   :  { %3451 = vmatpush3.bf16.msra.mxu0 %v3448_v6 }
0x10b4   :  { %3453 = vmatprep.subr.bf16.mxu0 %v3452_v11 }
0x10b7   :  { %3455 = vmatpush3.bf16.msra.mxu0 %v3452_v11 }
0x10b8   :  { %3456 = vmatprep.subr.bf16.mxu0 %v3720_v3 }
0x1185   :  { %v3193_v32 = vpop.f32.mrb[6].mxu0 }
0x1186   :  { %v1451_v33 = vadd.f32 %v3193_v32, %v2919_v31  ;;  %v1445_v34 = vpop.f32.mrb[7].mxu0 }
0x1187   :  { %v1446_v35 = vadd.f32 %v2919_v31, %v1445_v34 }
0x1188   :  { %v2923_v36 = vmul.f32 -1.702, %v1451_v33 }
0x1189   :  { %v2922_v37 = vmul.f32 -1.702, %v1446_v35 }
0x118a   :  { %v1460_v38 = vmul.f32 1.442695, %v2923_v36 }
0x118b   :  { %v1458_v54 = vmul.f32 1.442695, %v2922_v37 }
0x118c   :  { %3660 = vpow2.f32 %v1460_v38 }
0x118d   :  { %3662 = vpow2.f32 %v1458_v54 }
0x1196   :  { %v3661_v39 = vpop.eup %3660 }
0x1197   :  { %v3663_v53 = vpop.eup %3662  ;;  %v1463_v40 = vadd.f32 1.0, %v3661_v39 }
0x1198   :  { %v1462_v41 = vadd.f32 1.0, %v3663_v53 }
0x1199   :  { %3664 = vrcp.f32 %v1463_v40 }
0x119a   :  { %3666 = vrcp.f32 %v1462_v41 }
0x11a3   :  { %v3665_v44 = vpop.eup %3664 }
0x11a4   :  { %v3667_v45 = vpop.eup %3666  ;;  %v1469_v47 = vmul.f32 %v3665_v44, %v1451_v33  ;;  %v3738_v33 = vmov 0.0  }
0x11a5   :  { %v1468_v46 = vmul.f32 %v3667_v45, %v1446_v35 }
0x11a7   :  { %3210 = vmatprep.mubr.msk.f32.mxu1 %vm75_vm0, %v1468_v46 }
0x11a8   :  { %3211 = vmatmul.mubr.msk.f32.vlgmr.msra.gmra.mrb[18].mxu1 %vm75_vm0, %v1469_v47 }
0x11a9   :  { %3235 = vmatprep.mubr.msk.f32.mxu1 %vm3737_vm11, %v3738_v33 }
0x127b   :  { %v3212_v48 = vpop.f32.mrb[18].mxu1 }
0x127c   :  { %v1560_v14 = vadd.f32 %v3212_v48, %v4111_v42  ;;  %v1550_v10 = vpop.f32.mrb[19].mxu1 }
0x127d   :  { %v1559_v50 = vadd.f32 %v1550_v10, %v4113_v43 }
0x127e   :  { %v1570_v51 = vadd.f32 %v2927_v49, %v1560_v14 }
0x127f   :  { %v4178_v52 = vadd.f32 %v2927_v49, %v1559_v50 }
0x1280   :  { %v1578_v56 = vsel %vm160_vm1, %v1570_v51, 0.0 }
0x1281   :  { %1579 = vadd.xlane.f32.xlu1 %v1578_v56  ;;  %v1575_v57 = vsel %vm160_vm1, %v4178_v52, 0.0 }
0x1282   :  { %1576 = vadd.xlane.f32.xlu0 %v1575_v57 }
0x130e   :  { %v1580_v58 = vpop.xlane.xlu1 %1579 }
0x130f   :  { %v1582_v59 = vmul.f32 0.03125, %v1580_v58  ;;  %v1577_v60 = vpop.xlane.xlu0 %1576 }
0x1310   :  { %v1581_v61 = vmul.f32 0.03125, %v1577_v60 }
0x1311   :  { %v1584_v63 = vsub.f32 %v1570_v51, %v1582_v59 }
0x1312   :  { %v1583_v42 = vsub.f32 %v4178_v52, %v1581_v61 }
0x1313   :  { %v1586_v5 = vmul.f32 %v1584_v63, %v1584_v63 }
0x1314   :  { %v1585_v0 = vmul.f32 %v1583_v42, %v1583_v42 }
0x1315   :  { %v1590_v43 = vsel %vm160_vm1, %v1586_v5, 0.0 }
0x1316   :  { %1591 = vadd.xlane.f32.xlu1 %v1590_v43  ;;  %v1587_v1 = vsel %vm160_vm1, %v1585_v0, 0.0 }
0x1317   :  { %1588 = vadd.xlane.f32.xlu0 %v1587_v1 }
0x13a3   :  { %v1592_v55 = vpop.xlane.xlu1 %1591 }
0x13a4   :  { %v1594_v12 = vmul.f32 0.03125, %v1592_v55  ;;  %v1589_v13 = vpop.xlane.xlu0 %1588 }
0x13a5   :  { %v1593_v15 = vmul.f32 0.03125, %v1589_v13 }
0x13a6   :  { %v1596_v16 = vadd.f32 1e-05, %v1594_v12 }
0x13a7   :  { %v1595_v17 = vadd.f32 1e-05, %v1593_v15 }
0x13a8   :  { %3668 = vrsqrt.f32 %v1596_v16 }
0x13a9   :  { %3670 = vrsqrt.f32 %v1595_v17 }
0x13b2   :  { %v3669_v18 = vpop.eup %3668 }
0x13b3   :  { %v3671_v20 = vpop.eup %3670  ;;  %v1600_v22 = vmul.f32 %v3669_v18, %v1584_v63 }
0x13b4   :  { %v1599_v23 = vmul.f32 %v3671_v20, %v1583_v42 }
0x13b5   :  { %v1608_v25 = vmul.f32 %v2930_v19, %v1600_v22 }
0x13b6   :  { %v1607_v26 = vmul.f32 %v2930_v19, %v1599_v23 }
0x13b7   :  { %v1616_v21 = vadd.f32 %v2931_v24, %v1608_v25 }
0x13b8   :  { %v1615_v27 = vadd.f32 %v2931_v24, %v1607_v26 }
0x13ba   :  { %3221 = vmatprep.mubr.msk.f32.mxu0 %vm160_vm1, %v1615_v27 }
0x13bb   :  { %3222 = vmatmul.mubr.msk.f32.vlgmr.msra.gmra.mrb[8].mxu0 %vm160_vm1, %v1616_v21 }
0x13bc   :  { %3228 = vmatprep.mubr.msk.f32.mxu0 %vm3737_vm11, %v3738_v33 }
0x148e   :  { %v3223_v29 = vpop.f32.mrb[8].mxu0 }
0x148f   :  { %v1708_v30 = vadd.f32 %v3223_v29, %v2937_v28  ;;  %v1702_v31 = vpop.f32.mrb[9].mxu0 }
0x1490   :  { %v1703_v32 = vadd.f32 %v2937_v28, %v1702_v31 }
0x1491   :  { %1712 = vst.msk [vmem:[#allocation2 + $0x8] sm:$0xff] %vm365_vm2, %v1708_v30 }
0x1492   :  { %1711 = vst.msk [vmem:[#allocation2] sm:$0xff] %vm365_vm2, %v1703_v32  ;;  %vm2442_vm2 = vcmask 255168  }
0x1498   :  { %v1894_v34 = vld [vmem:[#allocation2 + $0x8] sm:$0xff] }
0x1499   :  { %v1893_v35 = vld [vmem:[#allocation2] sm:$0xff] }
0x149a   :  { %v4216_v36 = vpack.i.bf16 %v1894_v34, %v1893_v35  ;;  %v1892_v37 = vld [vmem:[#allocation2] sm:$0x3] }
0x149b   :  { %v1713_v46 = vld [vmem:[#allocation2] sm:$0x3] }
0x149c   :  { %3581 = vrot.lane.b32.xlu1 %v4216_v36, %s3726_s19  ;;  %3576 = vrot.lane.b32.xlu0 %v4216_v36, %s3721_s0  ;;  %v2076_v58 = vld [vmem:[#allocation2] sm:$0x3] }
0x149d   :  { %v2260_v35 = vld [vmem:[#allocation2] sm:$0x3] }
0x14a0   :  { %1896 = vrot.lane.b32.xlu1 %v1892_v37, %s3725_s18 }
0x150e   :  { %v3577_v38 = vpop.permute.xlu0 %3576  ;;  %v3582_v40 = vpop.permute.xlu1 %3581 }
0x150f   :  { %v3579_v54 = vunpack.i.h.bf16 %v3577_v38  ;;  %v3578_v39 = vunpack.i.l.bf16 %v3577_v38  ;;  %v3584_v41 = vunpack.i.h.bf16 %v3582_v40  ;;  %v3583_v44 = vunpack.i.l.bf16 %v3582_v40 }
0x1511   :  { %v3457_v53 = vpack.c.bf16 %v3579_v54, %v3578_v39  ;;  %v3464_v45 = vpack.c.bf16 %v3584_v41, %v3583_v44 }
0x1512   :  { %v1897_v47 = vpop.permute.xlu1 %1896 }
0x1513   :  { %3459 = vmatpush3.bf16.xpose.msk.msra.mxu0 %vm3981_vm4, %v3457_v53 }
0x1514   :  { %3463 = vmatprep.subr.bf16.mxu0 %v3720_v3 }
0x151a   :  { %3229 = vmatmul.mubr.msk.f32.vlgmr.msra.gmra.mrb[10].mxu0 %vm376_vm3, %v1713_v46 }
0x151b   :  { %3466 = vmatpush3.bf16.xpose.msk.msra.mxu0 %vm3981_vm4, %v3464_v45  ;;  %3242 = vmatprep.mubr.msk.f32.mxu0 %vm3737_vm11, %v3738_v33 }
0x151c   :  { %3474 = vmatprep.subr.bf16.mxu0 %v3720_v3 }
0x1522   :  { %3243 = vmatmul.mubr.msk.f32.vlgmr.msra.gmra.mrb[12].mxu0 %vm376_vm3, %v1897_v47 }
0x1523   :  { %3263 = vmatprep.mubr.msk.f32.mxu0 %vm3737_vm11, %v3738_v33 }
0x15ed   :  { %v1795_v48 = vpop.f32.mrb[10].mxu0 }
0x15ee   :  { %v1796_v49 = vadd.f32 %v1795_v48, %v3996_v7  ;;  %v3230_v14 = vpop.f32.mrb[11].mxu0 }
0x15f0   :  { %v1800_v10 = vsel %vm1799_vm12, %v1796_v49, -inf }
0x15f1   :  { %1801 = vmax.xlane.f32.xlu1 %v1800_v10 }
0x15f5   :  { %v1976_v50 = vpop.f32.mrb[12].mxu0 }
0x15f6   :  { %v1977_v51 = vadd.f32 %v1976_v50, %v3996_v7  ;;  %v3244_v56 = vpop.f32.mrb[13].mxu0 }
0x15f8   :  { %v1980_v57 = vsel %vm1799_vm12, %v1977_v51, -inf }
0x15f9   :  { %1981 = vmax.xlane.f32.xlu0 %v1980_v57 }
0x1602   :  { %3586 = vrot.lane.b32.xlu1 %v4216_v36, %s3724_s4 }
0x1606   :  { %3596 = vrot.lane.b32.xlu1 %v4216_v36, %s3729_s22 }
0x160a   :  { %2080 = vrot.lane.b32.xlu1 %v2076_v58, %s3728_s21 }
0x167e   :  { %v1802_v59 = vpop.xlane.xlu1 %1801 }
0x167f   :  { %v1803_v60 = vsub.f32 %v1796_v49, %v1802_v59 }
0x1681   :  { %v1804_v61 = vmul.f32 1.442695, %v1803_v60 }
0x1682   :  { %v3587_v63 = vpop.permute.xlu1 %3586 }
0x1683   :  { %3672 = vpow2.f32 %v1804_v61  ;;  %v3589_v42 = vunpack.i.h.bf16 %v3587_v63  ;;  %v3588_v5 = vunpack.i.l.bf16 %v3587_v63 }
0x1685   :  { %v3461_v0 = vpack.c.bf16 %v3589_v42, %v3588_v5 }
0x1686   :  { %v1982_v43 = vpop.xlane.xlu0 %1981  ;;  %v3597_v19 = vpop.permute.xlu1 %3596 }
0x1687   :  { %v1983_v1 = vsub.f32 %v1977_v51, %v1982_v43  ;;  %3462 = vmatpush3.bf16.msra.mxu1 %v3461_v0  ;;  %v3599_v22 = vunpack.i.h.bf16 %v3597_v19  ;;  %v3598_v23 = vunpack.i.l.bf16 %v3597_v19 }
0x1688   :  { %3467 = vmatprep.subr.bf16.mxu1 %v3720_v3 }
0x1689   :  { %v1984_v2 = vmul.f32 1.442695, %v1983_v1  ;;  %v3471_v25 = vpack.c.bf16 %v3599_v22, %v3598_v23  ;;  %v2962_v23 = vld [vmem:[%s4417_s5 + $0xe] ss:$0 sm:$0xff] }
0x168a   :  { %v2081_v26 = vpop.permute.xlu1 %2080 }
0x168b   :  { %3674 = vpow2.f32 %v1984_v2 }
0x168d   :  { %v3673_v4 = vpop.eup %3672 }
0x168e   :  { %v1806_v6 = vsel %vm1799_vm12, %v3673_v4, 0.0 }
0x168f   :  { %1807 = vadd.xlane.f32.xlu0 %v1806_v6 }
0x1695   :  { %v3675_v8 = vpop.eup %3674 }
0x1696   :  { %v1986_v9 = vsel %vm1799_vm12, %v3675_v8, 0.0 }
0x1697   :  { %1987 = vadd.xlane.f32.xlu0 %v1986_v9 }
0x16ad   :  { %3591 = vrot.lane.b32.xlu0 %v4216_v36, %s3727_s20 }
0x171c   :  { %v1808_v11 = vpop.xlane.xlu0 %1807 }
0x171d   :  { %3676 = vrcp.f32 %v1808_v11  ;;  %v2956_v11 = vld [vmem:[%s4420_s8 + $0x20] sm:$0xff] }
0x1724   :  { %v1988_v55 = vpop.xlane.xlu0 %1987 }
0x1725   :  { %3678 = vrcp.f32 %v1988_v55  ;;  %v2957_v55 = vld [vmem:[%s4420_s8 + $0x28] sm:$0xff] }
0x1727   :  { %v3677_v12 = vpop.eup %3676 }
0x1728   :  { %v1810_v13 = vmul.f32 %v3677_v12, %v3673_v4  ;;  %v3592_v15 = vpop.permute.xlu0 %3591  ;;  %v3485_v12 = vpack.c.bf16 %v2957_v55, %v2956_v11 }
0x1729   :  { %v3594_v16 = vunpack.i.h.bf16 %v3592_v15  ;;  %v3593_v17 = vunpack.i.l.bf16 %v3592_v15  ;;  %v2959_v15 = vld [vmem:[%s4420_s8 + $0x38] sm:$0xff] }
0x172a   :  { %3236 = vmatmul.mubr.msk.f32.vlgmr.msra.gmra.mrb[20].mxu1 %vm460_vm7, %v1810_v13  ;;  %v2958_v13 = vld [vmem:[%s4420_s8 + $0x30] sm:$0xff] }
0x172b   :  { %v3468_v18 = vpack.c.bf16 %v3594_v16, %v3593_v17  ;;  %3249 = vmatprep.mubr.msk.f32.mxu1 %vm3737_vm11, %v3738_v33  ;;  %v3488_v16 = vpack.c.bf16 %v2959_v15, %v2958_v13 }
0x172d   :  { %3469 = vmatpush3.bf16.msra.mxu1 %v3468_v18 }
0x172e   :  { %3470 = vmatprep.subr.bf16.mxu1 %v3720_v3 }
0x172f   :  { %v3679_v20 = vpop.eup %3678 }
0x1730   :  { %v1990_v24 = vmul.f32 %v3679_v20, %v3675_v8 }
0x1732   :  { %3250 = vmatmul.mubr.msk.f32.vlgmr.msra.gmra.mrb[22].mxu1 %vm460_vm7, %v1990_v24 }
0x1733   :  { %3256 = vmatprep.mubr.msk.f32.mxu1 %vm3737_vm11, %v3738_v33 }
0x1736   :  { %3473 = vmatpush3.bf16.xpose.msk.msra.mxu1 %vm3981_vm4, %v3471_v25 }
0x1737   :  { %3481 = vmatprep.subr.bf16.mxu1 %v3720_v3 }
0x173d   :  { %3257 = vmatmul.mubr.msk.f32.vlgmr.msra.gmra.mrb[24].mxu1 %vm376_vm3, %v2081_v26 }
0x173e   :  { %3277 = vmatprep.mubr.msk.f32.mxu1 %vm3737_vm11, %v3738_v33 }
0x17fd   :  { %v1886_v27 = vpop.f32.mrb[20].mxu1 }
0x17fe   :  { %1891 = vst.msk [vmem:[#allocation3] sm:$0x3] %vm1890_vm13, %v1886_v27  ;;  %v3237_v21 = vpop.f32.mrb[21].mxu1 }
0x1805   :  { %v2066_v28 = vpop.f32.mrb[22].mxu1 }
0x1806   :  { %v3251_v29 = vpop.f32.mrb[23].mxu1 }
0x1810   :  { %v2160_v30 = vpop.f32.mrb[24].mxu1 }
0x1811   :  { %v2161_v31 = vadd.f32 %v2160_v30, %v3996_v7  ;;  %v3258_v32 = vpop.f32.mrb[25].mxu1 }
0x1812   :  { %v2968_v32 = vld [vmem:[%s4421_s9 + $0x28] sm:$0xff] }
0x1813   :  { %v2164_v34 = vsel %vm1799_vm12, %v2161_v31, -inf }
0x1814   :  { %2165 = vmax.xlane.f32.xlu1 %v2164_v34 }
0x1825   :  { %3606 = vrot.lane.b32.xlu1 %v4216_v36, %s3732_s25 }
0x1829   :  { %2264 = vrot.lane.b32.xlu1 %v2260_v35, %s3731_s24  ;;  %v2969_v35 = vld [vmem:[%s4421_s9 + $0x30] sm:$0xff] }
0x18a1   :  { %v2166_v37 = vpop.xlane.xlu1 %2165 }
0x18a2   :  { %v2167_v38 = vsub.f32 %v2161_v31, %v2166_v37  ;;  %v2970_v37 = vld [vmem:[%s4421_s9 + $0x38] sm:$0xff] }
0x18a4   :  { %v2168_v54 = vmul.f32 1.442695, %v2167_v38  ;;  %v3494_v38 = vpack.c.bf16 %v2970_v37, %v2969_v35 }
0x18a5   :  { %v3607_v47 = vpop.permute.xlu1 %3606 }
0x18a6   :  { %3680 = vpow2.f32 %v2168_v54  ;;  %v3609_v49 = vunpack.i.h.bf16 %v3607_v47  ;;  %v3608_v14 = vunpack.i.l.bf16 %v3607_v47 }
0x18a8   :  { %v3478_v50 = vpack.c.bf16 %v3609_v49, %v3608_v14  ;;  %v2976_v49 = vld [vmem:[%s4423_s11 + $0x48] sm:$0xff] }
0x18a9   :  { %v2265_v51 = vpop.permute.xlu1 %2264 }
0x18b0   :  { %v3681_v39 = vpop.eup %3680 }
0x18b1   :  { %v2170_v53 = vsel %vm1799_vm12, %v3681_v39, 0.0 }
0x18b2   :  { %2171 = vadd.xlane.f32.xlu0 %v2170_v53 }
0x18c8   :  { %3601 = vrot.lane.b32.xlu0 %v4216_v36, %s3730_s23 }
0x193f   :  { %v2172_v40 = vpop.xlane.xlu0 %2171 }
0x1940   :  { %3682 = vrcp.f32 %v2172_v40 }
0x1943   :  { %v3602_v41 = vpop.permute.xlu0 %3601 }
0x1944   :  { %v3604_v44 = vunpack.i.h.bf16 %v3602_v41  ;;  %v3603_v45 = vunpack.i.l.bf16 %v3602_v41  ;;  %v2965_v41 = vld [vmem:[%s4417_s5 + $0xc] ss:$0 sm:$0xff] }
0x1946   :  { %v3475_v46 = vpack.c.bf16 %v3604_v44, %v3603_v45  ;;  %v2966_v45 = vld [vmem:[%s4417_s5 + $0xd] ss:$0 sm:$0xff] }
0x1948   :  { %3476 = vmatpush3.bf16.msra.mxu0 %v3475_v46 }
0x1949   :  { %3477 = vmatprep.subr.bf16.mxu0 %v3720_v3 }
0x194a   :  { %v3683_v48 = vpop.eup %3682 }
0x194b   :  { %v2174_v10 = vmul.f32 %v3683_v48, %v3681_v39  ;;  %v2975_v48 = vld [vmem:[%s4423_s11 + $0x40] sm:$0xff] }
0x194c   :  { %v3497_v14 = vpack.c.bf16 %v2976_v49, %v2975_v48 }
0x194d   :  { %3264 = vmatmul.mubr.msk.f32.vlgmr.msra.gmra.mrb[14].mxu0 %vm460_vm7, %v2174_v10  ;;  %v2977_v10 = vld [vmem:[%s4423_s11 + $0x50] sm:$0xff] }
0x194e   :  { %3270 = vmatprep.mubr.msk.f32.mxu0 %vm3737_vm11, %v3738_v33 }
0x1951   :  { %3480 = vmatpush3.bf16.xpose.msk.msra.mxu0 %vm3981_vm4, %v3478_v50 }
0x1952   :  { %3490 = vmatprep.subr.bf16.mxu0 %v3720_v3 }
0x1958   :  { %3271 = vmatmul.mubr.msk.f32.vlgmr.msra.gmra.mrb[16].mxu0 %vm376_vm3, %v2265_v51  ;;  %vm2537_vm3 = vcmask 254976   ;;  %v2979_v51 = vld [vmem:[%s4423_s11 + $0x60] sm:$0xff] }
0x1959   :  { %3299 = vmatprep.mubr.msk.f32.mxu0 %vm3737_vm11, %v3738_v33 }
0x1a20   :  { %v2250_v56 = vpop.f32.mrb[14].mxu0 }
0x1a21   :  { %v3265_v57 = vpop.f32.mrb[15].mxu0 }
0x1a2b   :  { %v2344_v58 = vpop.f32.mrb[16].mxu0 }
0x1a2c   :  { %v2345_v59 = vadd.f32 %v2344_v58, %v3996_v7  ;;  %v3272_v60 = vpop.f32.mrb[17].mxu0  ;;  %v2981_v58 = vld [vmem:[%s4423_s11 + $0x70] sm:$0xff] }
0x1a2e   :  { %v2348_v61 = vsel %vm1799_vm12, %v2345_v59, -inf }
0x1a2f   :  { %2349 = vmax.xlane.f32.xlu0 %v2348_v61  ;;  %v2972_v61 = vld [vmem:[%s4422_s10 + $0x1] ss:$0 sm:$0xff] }
0x1a45   :  { %3611 = vrot.lane.b32.xlu0 %v4216_v36, %s3733_s26 }
0x1a49   :  { %2255 = vrot.lane.b32.xlu0 %v2250_v56, %s3735_s28  ;;  %v2980_v56 = vld [vmem:[%s4423_s11 + $0x68] sm:$0xff] }
0x1a4a   :  { %v3503_v57 = vpack.c.bf16 %v2980_v56, %v2979_v51 }
0x1abc   :  { %v2350_v62 = vpop.xlane.xlu0 %2349 }
0x1abd   :  { %v2351_v63 = vsub.f32 %v2345_v59, %v2350_v62  ;;  %v2982_v59 = vld [vmem:[%s4423_s11 + $0x78] sm:$0xff] }
0x1abe   :  { %v3506_v60 = vpack.c.bf16 %v2982_v59, %v2981_v58 }
0x1abf   :  { %v2352_v42 = vmul.f32 1.442695, %v2351_v63 }
0x1ac0   :  { %v3612_v5 = vpop.permute.xlu0 %3611 }
0x1ac1   :  { %3684 = vpow2.f32 %v2352_v42  ;;  %v3614_v0 = vunpack.i.h.bf16 %v3612_v5  ;;  %v3613_v43 = vunpack.i.l.bf16 %v3612_v5 }
0x1ac3   :  { %v3482_v1 = vpack.c.bf16 %v3614_v0, %v3613_v43 }
0x1ac4   :  { %v2256_v6 = vpop.permute.xlu0 %2255 }
0x1ac5   :  { %3483 = vmatpush3.bf16.msra.mxu1 %v3482_v1 }
0x1ac6   :  { %3484 = vmatprep.subr.bf16.mxu1 %v3720_v3 }
0x1acb   :  { %v3685_v7 = vpop.eup %3684 }
0x1acc   :  { %v2354_v2 = vsel %vm1799_vm12, %v3685_v7, 0.0 }
0x1acd   :  { %2355 = vadd.xlane.f32.xlu1 %v2354_v2 }
0x1ade   :  { %2071 = vrot.lane.b32.xlu1 %v2066_v28, %s3734_s27 }
0x1b5a   :  { %v2356_v36 = vpop.xlane.xlu1 %2355 }
0x1b5b   :  { %3686 = vrcp.f32 %v2356_v36 }
0x1b5e   :  { %v2072_v4 = vpop.permute.xlu1 %2071 }
0x1b5f   :  { %2075 = vst.msk [vmem:[#allocation3] sm:$0x3] %vm2074_vm14, %v2072_v4  ;;  %v2985_v4 = vld [vmem:[%s4417_s5 + $0xf] ss:$0 sm:$0xff] }
0x1b60   :  { %2259 = vst.msk [vmem:[#allocation3] sm:$0x3] %vm2258_vm15, %v2256_v6 }
0x1b65   :  { %v3687_v8 = vpop.eup %3686 }
0x1b66   :  { %v2358_v9 = vmul.f32 %v3687_v8, %v3685_v7 }
0x1b68   :  { %3278 = vmatmul.mubr.msk.f32.vlgmr.msra.gmra.mrb[26].mxu1 %vm460_vm7, %v2358_v9 }
0x1b69   :  { %3288 = vmatprep.mubr.msk.f32.mxu1 %vm3737_vm11, %v3738_v33  ;;  %3486 = vmatpush3.bf16.msra.mxu1 %v3485_v12 }
0x1b6a   :  { %3487 = vmatprep.subr.bf16.mxu1 %v3720_v3 }
0x1b6d   :  { %3489 = vmatpush3.bf16.msra.mxu1 %v3488_v16 }
0x1b6e   :  { %3496 = vmatprep.subr.bf16.mxu1 %v3720_v3 }
0x1c3b   :  { %v2434_v17 = vpop.f32.mrb[26].mxu1 }
0x1c3c   :  { %2439 = vrot.lane.b32.xlu1 %v2434_v17, %s3736_s17  ;;  %v3279_v18 = vpop.f32.mrb[27].mxu1  ;;  %v2782_v17 = vld [vmem:[%s4424_s12] sm:$0xff] }
0x1c3d   :  { %v2783_v18 = vld [vmem:[%s4424_s12 + $0x8] sm:$0xff] }
0x1cae   :  { %v2440_v19 = vpop.permute.xlu1 %2439 }
0x1caf   :  { %2443 = vst.msk [vmem:[#allocation3] sm:$0x3] %vm2442_vm2, %v2440_v19  ;;  %v3509_v19 = vpack.c.bf16 %v2783_v18, %v2782_v17 }
0x1cb6   :  { %v2444_v20 = vld [vmem:[#allocation3] sm:$0x3] }
0x1cb7   :  { %3289 = vmatmul.mubr.msk.f32.vlgmr.msra.gmra.mrb[28].mxu1 %vm160_vm1, %v2444_v20  ;;  %v2784_v20 = vld [vmem:[%s4424_s12 + $0x10] sm:$0xff] }
0x1cb8   :  { %3318 = vmatprep.mubr.msk.f32.mxu1 %vm3737_vm11, %v3738_v33  ;;  %3498 = vmatpush3.bf16.msra.mxu1 %v3497_v14 }
0x1cb9   :  { %3499 = vmatprep.subr.bf16.mxu1 %v3720_v3 }
0x1d8a   :  { %v2519_v22 = vpop.f32.mrb[28].mxu1 }
0x1d8b   :  { %v2523_v24 = vadd.f32 %v2519_v22, %v4178_v52  ;;  %v3290_v25 = vpop.f32.mrb[29].mxu1  ;;  %v2967_v52 = vld [vmem:[%s4421_s9 + $0x20] sm:$0xff]  ;;  %v2785_v22 = vld [vmem:[%s4424_s12 + $0x18] sm:$0xff]  ;;  %s3739_s12 = smov [#allocation4]  }
0x1d8c   :  { %v3491_v34 = vpack.c.bf16 %v2968_v32, %v2967_v52  ;;  %s2866_s7 = sshll.u32 %s3739_s12, 4  ;;  %s2867_s7 = int_to_ptr.vmem [resolvable:$true] %s2866_s7 }
0x1d8d   :  { %v4313_v26 = vadd.f32 %v2962_v23, %v2523_v24  ;;  %v3512_v23 = vpack.c.bf16 %v2785_v22, %v2784_v20  ;;  %s3696_s0 = scalar_lea.vmem %s2867_s7, 32  ;;  %p3701_p1 = scmp.lt.s32.totalorder %s2867_s7, %s2867_s7 }
0x1d8e   :  { %3492 = vmatpush3.bf16.msra.mxu0 %v3491_v34  ;;  %p3697_p0 = scmp.ne.s32.totalorder %s2867_s7, %s3696_s0  ;;  %p3702_p2 = scmp.lt.s32.totalorder %s3696_s0, %s3696_s0 }
0x1d8f   :  { %v2538_v27 = vsel %vm2537_vm3, %v4313_v26, 0.0  ;;  %3493 = vmatprep.subr.bf16.mxu0 %v3720_v3 }
0x1d90   :  { %2539 = vadd.xlane.f32.xlu0 %v2538_v27  ;;  %p3703_p3 = por %p3702_p2, %p3701_p1 }
0x1d92   :  { %3495 = vmatpush3.bf16.msra.mxu0 %v3494_v38  ;;  %p3704_p4 = pnand %p3703_p3, %p3697_p0 }
0x1d93   :  { %3508 = vmatprep.subr.bf16.mxu0 %v3720_v3 }
0x1e1d   :  { %v2540_v21 = vpop.xlane.xlu0 %2539 }
0x1e1e   :  { %v2541_v28 = vmul.f32 0.03125, %v2540_v21  ;;  %v2988_v21 = vld [vmem:[%s4417_s5 + $0x2] ss:$0 sm:$0xff] }
0x1e20   :  { %v2542_v29 = vsub.f32 %v4313_v26, %v2541_v28  ;;  %v2989_v28 = vld [vmem:[%s4417_s5 + $0x3] ss:$0 sm:$0xff] }
0x1e22   :  { %v2543_v30 = vmul.f32 %v2542_v29, %v2542_v29 }
0x1e24   :  { %v2544_v31 = vsel %vm2537_vm3, %v2543_v30, 0.0 }
0x1e25   :  { %2545 = vadd.xlane.f32.xlu1 %v2544_v31 }
0x1eb2   :  { %v2546_v54 = vpop.xlane.xlu1 %2545 }
0x1eb3   :  { %v2547_v39 = vmul.f32 0.03125, %v2546_v54 }
0x1eb5   :  { %v2548_v53 = vadd.f32 1e-05, %v2547_v39 }
0x1eb7   :  { %3688 = vrsqrt.f32 %v2548_v53 }
0x1ec1   :  { %v3689_v40 = vpop.eup %3688 }
0x1ec2   :  { %v2550_v44 = vmul.f32 %v3689_v40, %v2542_v29 }
0x1ec4   :  { %v2557_v46 = vmul.f32 %v2965_v41, %v2550_v44 }
0x1ec6   :  { %v2564_v47 = vadd.f32 %v2966_v45, %v2557_v46 }
0x1ec8   :  { %3300 = vmatmul.mubr.msk.f32.vlgmr.msra.gmra.mrb[18].mxu0 %vm160_vm1, %v2564_v47 }
0x1ec9   :  { %3329 = vmatprep.mubr.msk.f32.mxu0 %vm3737_vm11, %v3738_v33  ;;  %v2978_v33 = vld [vmem:[%s4423_s11 + $0x58] sm:$0xff]  ;;  %3510 = vmatpush3.bf16.msra.mxu0 %v3509_v19 }
0x1eca   :  { %v3500_v50 = vpack.c.bf16 %v2978_v33, %v2977_v10  ;;  %3511 = vmatprep.subr.bf16.mxu0 %v3720_v3 }
0x1ecc   :  { %3501 = vmatpush3.bf16.msra.mxu1 %v3500_v50 }
0x1ecd   :  { %3502 = vmatprep.subr.bf16.mxu1 %v3720_v3  ;;  %3513 = vmatpush3.bf16.msra.mxu0 %v3512_v23 }
0x1ed0   :  { %3504 = vmatpush3.bf16.msra.mxu1 %v3503_v57 }
0x1ed1   :  { %3505 = vmatprep.subr.bf16.mxu1 %v3720_v3 }
0x1ed4   :  { %3507 = vmatpush3.bf16.msra.mxu1 %v3506_v60 }
0x1f9b   :  { %v2647_v62 = vpop.f32.mrb[18].mxu0 }
0x1f9c   :  { %v2648_v63 = vadd.f32 %v2972_v61, %v2647_v62  ;;  %v3301_v42 = vpop.f32.mrb[19].mxu0 }
0x1f9e   :  { %v2974_v5 = vmul.f32 -1.702, %v2648_v63 }
0x1fa0   :  { %v2653_v0 = vmul.f32 1.442695, %v2974_v5 }
0x1fa2   :  { %3690 = vpow2.f32 %v2653_v0 }
0x1fac   :  { %v3691_v43 = vpop.eup %3690 }
0x1fad   :  { %v2655_v1 = vadd.f32 1.0, %v3691_v43 }
0x1faf   :  { %3692 = vrcp.f32 %v2655_v1 }
0x1fb9   :  { %v3693_v7 = vpop.eup %3692 }
0x1fba   :  { %v2658_v2 = vmul.f32 %v3693_v7, %v2648_v63 }
0x1fbc   :  { %3319 = vmatmul.mubr.msk.f32.vlgmr.msra.gmra.mrb[30].mxu1 %vm75_vm0, %v2658_v2 }
0x208f   :  { %v2737_v36 = vpop.f32.mrb[30].mxu1 }
0x2090   :  { %v2741_v6 = vadd.f32 %v2737_v36, %v4313_v26  ;;  %v3320_v8 = vpop.f32.mrb[31].mxu1 }
0x2092   :  { %v2750_v9 = vadd.f32 %v2985_v4, %v2741_v6 }
0x2094   :  { %v2755_v11 = vsel %vm2537_vm3, %v2750_v9, 0.0 }
0x2095   :  { %2756 = vadd.xlane.f32.xlu0 %v2755_v11 }
0x2122   :  { %v2757_v55 = vpop.xlane.xlu0 %2756 }
0x2123   :  { %v2758_v12 = vmul.f32 0.03125, %v2757_v55 }
0x2125   :  { %v2759_v13 = vsub.f32 %v2750_v9, %v2758_v12 }
0x2127   :  { %v2760_v15 = vmul.f32 %v2759_v13, %v2759_v13 }
0x2129   :  { %v2761_v16 = vsel %vm2537_vm3, %v2760_v15, 0.0 }
0x212a   :  { %2762 = vadd.xlane.f32.xlu0 %v2761_v16 }
0x21b7   :  { %v2763_v24 = vpop.xlane.xlu0 %2762 }
0x21b8   :  { %v2764_v25 = vmul.f32 0.03125, %v2763_v24 }
0x21ba   :  { %v2765_v26 = vadd.f32 1e-05, %v2764_v25 }
0x21bc   :  { %3694 = vrsqrt.f32 %v2765_v26 }
0x21c6   :  { %v3695_v27 = vpop.eup %3694 }
0x21c7   :  { %v2767_v3 = vmul.f32 %v3695_v27, %v2759_v13 }
0x21c9   :  { %v2774_v29 = vmul.f32 %v2988_v21, %v2767_v3 }
0x21cb   :  { %v2781_v30 = vadd.f32 %v2989_v28, %v2774_v29 }
0x21cd   :  { %3330 = vmatmul.mubr.msk.f32.vlgmr.msra.gmra.mrb[20].mxu0 %vm160_vm1, %v2781_v30 }
0x22a0   :  { %v2855_v31 = vpop.f32.mrb[20].mxu0 }
0x22a1   :  { %2859 = vst.msk [vmem:[#allocation4] sm:$0x3] %vm1799_vm12, %v2855_v31  ;;  %v3331_v52 = vpop.f32.mrb[21].mxu0 }
0x22a2   :  { %3707 = shalt.err (!%p3704_p4)
}
0x22a3   :  { %s3708_s18 = scalar_lea.hbm %s4425_s13, 32 }
0x22a4   :  { %p3709_p5 = scmp.ne.s32.totalorder %s4425_s13, %s3708_s18  ;;  %p3712_p6 = scmp.lt.u32.totalorder %s3708_s18, %s4425_s13 }
0x22a6   :  { %p3714_p7 = pnand %p3712_p6, %p3709_p5 }
0x22a8   :  { %3717 = shalt.err (!%p3714_p7)
}
0x22a9   :  { %2869 = dma.vmem_to_hbm [thread:$0]  %s2867_s7, 32, %s4425_s13, [#allocation5]  }
0x22aa   :  { %3718 = dma.done.wait [#allocation5], 32  }
0x22ab   :  { %3719 = vsyncadd [#allocation5], 4294967264 }
0x22ac   :  { %2873 = vsyncpa [#allocation5], 1 }

</bundles_post_ra>
